<compile_context>
chip_gen: v7x
topology: tpu7x:2x2x1
jax: 0.10.0
libtpu: 0.0.40
codegen_flags: <defaults>
</compile_context>

<pallas_src>
import jax
import jax.numpy as jnp
from jax.experimental import pallas as pl
from jax.experimental.pallas import tpu as pltpu

K_PAD = 896    # 7 * 128, padded input-feature dim (784 -> 896)
C_PAD = 128    # lane-dense padded class dim (10 -> 128)
HID = 512
NCLASS = 10


def mnist_mlp_kernel(x_ref, w1_ref, b1_ref, w2_ref, b2_ref, w3_ref, b3_ref, out_ref):
    # fc1 + relu (bf16 matmul on the MXU, f32 accumulate / elementwise)
    h1 = jnp.dot(x_ref[...], w1_ref[...], preferred_element_type=jnp.float32)
    h1 = jnp.maximum(h1 + b1_ref[...], 0.0).astype(jnp.bfloat16)
    # fc2 + relu
    h2 = jnp.dot(h1, w2_ref[...], preferred_element_type=jnp.float32)
    h2 = jnp.maximum(h2 + b2_ref[...], 0.0).astype(jnp.bfloat16)
    # fc3 (classes padded to 128; padded columns carry a ~-inf bias so exp() -> 0)
    logits = jnp.dot(h2, w3_ref[...], preferred_element_type=jnp.float32) + b3_ref[...]
    # softmax over dim=1 (classes), max-stabilized, all in f32
    m = jnp.max(logits, axis=-1, keepdims=True)
    e = jnp.exp(logits - m)
    denom = jnp.sum(e, axis=-1, keepdims=True)
    out_ref[...] = (e * pl.reciprocal(denom, approx=True)).astype(out_ref.dtype)


def _choose_tm(B: int) -> int:
    """Batch-tile size.

    - Small batches: one tile, rounded up to the bf16 sublane tile (16).
    - Large batches: >=2 grid steps (so v7x's second TensorCore shards the batch),
      256-aligned tiles for the 256-wide MXU on v6e/v7x, capped at 1024 so the
      per-step working set (~14 MiB with f32 intermediates) fits comfortably in
      a 32 MiB VMEM budget on v7x (64 MiB physical).
    """
    if B <= 256:
        return max(16, pl.cdiv(B, 16) * 16)
    half = pl.cdiv(B, 2)
    return min(1024, pl.cdiv(half, 256) * 256)


def mnist_forward(x_nchw, params):
    w1, b1, w2, b2, w3, b3 = params      # f32, weights stored (in, out)
    B = x_nchw.shape[0]

    # x.view(-1, 784); cast to bf16 *before* padding so the pads write bf16 bytes.
    x = x_nchw.reshape(B, 28 * 28).astype(jnp.bfloat16)

    # ---- pad feature dim 784 -> 896 (zeros) ----
    x = jnp.pad(x, ((0, 0), (0, K_PAD - 28 * 28)))
    w1p = jnp.pad(w1, ((0, K_PAD - 28 * 28), (0, 0))).astype(jnp.bfloat16)

    # ---- pad class dim 10 -> 128 (zero weight cols, -1e30 bias => exp -> 0) ----
    w3p = jnp.pad(w3, ((0, 0), (0, C_PAD - NCLASS))).astype(jnp.bfloat16)
    b3p = jnp.pad(b3, ((0, 0), (0, C_PAD - NCLASS)), constant_values=-1e30)

    w2b = w2.astype(jnp.bfloat16)

    # ---- batch tiling ----
    TM = _choose_tm(B)
    Bp = pl.cdiv(B, TM) * TM
    xp = jnp.pad(x, ((0, Bp - B), (0, 0)))
    grid = (Bp // TM,)

    flops = 2 * Bp * (K_PAD * HID + HID * HID + HID * C_PAD)
    bytes_accessed = (
        xp.size * 2 + w1p.size * 2 + w2b.size * 2 + w3p.size * 2
        + b1.size * 4 + b2.size * 4 + b3p.size * 4 + Bp * C_PAD * 2
    )

    # Weights / biases never change across grid steps -> single-buffered.
    resident = pl.Buffered(1)

    out = pl.pallas_call(
        mnist_mlp_kernel,
        out_shape=jax.ShapeDtypeStruct((Bp, C_PAD), jnp.bfloat16),
        grid=grid,
        in_specs=[
            pl.BlockSpec((TM, K_PAD), lambda i: (i, 0)),                            # x tile
            pl.BlockSpec((K_PAD, HID), lambda i: (0, 0), pipeline_mode=resident),   # W1 (resident)
            pl.BlockSpec((1, HID), lambda i: (0, 0), pipeline_mode=resident),       # b1
            pl.BlockSpec((HID, HID), lambda i: (0, 0), pipeline_mode=resident),     # W2 (resident)
            pl.BlockSpec((1, HID), lambda i: (0, 0), pipeline_mode=resident),       # b2
            pl.BlockSpec((HID, C_PAD), lambda i: (0, 0), pipeline_mode=resident),   # W3 (resident, padded)
            pl.BlockSpec((1, C_PAD), lambda i: (0, 0), pipeline_mode=resident),     # b3 (padded, -inf tail)
        ],
        out_specs=pl.BlockSpec((TM, C_PAD), lambda i: (i, 0)),
        compiler_params=pltpu.CompilerParams(
            dimension_semantics=("parallel",),
            vmem_limit_bytes=32 << 20,
        ),
        cost_estimate=pl.CostEstimate(
            flops=flops,
            transcendentals=Bp * C_PAD,
            bytes_accessed=bytes_accessed,
        ),
    )(xp, w1p, b1, w2b, b2, w3p, b3p)

    # strip batch + class padding; return f32 like the PyTorch module
    return out[:B, :NCLASS].astype(jnp.float32)


def init_params(key):
    k1, k2, k3, k4, k5, k6 = jax.random.split(key, 6)
    # Matches nn.Linear init ranges (uniform +/- 1/sqrt(fan_in)); weights stored (in, out).
    def lin(kw, kb, fan_in, fan_out):
        bound = 1.0 / jnp.sqrt(float(fan_in))
        w = jax.random.uniform(kw, (fan_in, fan_out), jnp.float32, -bound, bound)
        b = jax.random.uniform(kb, (1, fan_out), jnp.float32, -bound, bound)
        return w, b

    w1, b1 = lin(k1, k2, 28 * 28, HID)
    w2, b2 = lin(k3, k4, HID, HID)
    w3, b3 = lin(k5, k6, HID, NCLASS)
    return (w1, b1, w2, b2, w3, b3)


def mnist_reference(x_nchw, params):
    # Pure-JAX f32 reference for correctness checking.
    w1, b1, w2, b2, w3, b3 = params
    B = x_nchw.shape[0]
    x = x_nchw.reshape(B, 28 * 28).astype(jnp.float32)
    h1 = jnp.maximum(x @ w1 + b1, 0.0)
    h2 = jnp.maximum(h1 @ w2 + b2, 0.0)
    return jax.nn.softmax(h2 @ w3 + b3, axis=-1)


if __name__ == "__main__":
    key = jax.random.PRNGKey(0)
    kx, kp = jax.random.split(key)
    params = init_params(kp)

    # Small MNIST-style batch: (B, C=1, H=28, W=28) NCHW like PyTorch.
    x = jax.random.normal(kx, (8, 1, 28, 28), jnp.float32)

    out = mnist_forward(x, params)
    out = jax.block_until_ready(out)

    ref = mnist_reference(x, params)

    # sanity: shape, softmax rows sum to ~1 (bf16 matmuls/output + approx reciprocal),
    # and agreement with the f32 reference.
    assert out.shape == (8, 10)
    assert jnp.allclose(jnp.sum(out, axis=1), 1.0, atol=2e-2)
    assert jnp.allclose(out, ref, atol=5e-2)
    print("KERNEL_OK")
</pallas_src>

<mosaic_0001>
module attributes {stable_mosaic.version = 11 : i64} {
  func.func @mnist_mlp_kernel(%arg0: i32, %arg1: memref<16x896xbf16, #tpu.memory_space<vmem>>, %arg2: memref<896x512xbf16, #tpu.memory_space<vmem>>, %arg3: memref<1x512xf32, #tpu.memory_space<vmem>>, %arg4: memref<512x512xbf16, #tpu.memory_space<vmem>>, %arg5: memref<1x512xf32, #tpu.memory_space<vmem>>, %arg6: memref<512x128xbf16, #tpu.memory_space<vmem>>, %arg7: memref<1x128xf32, #tpu.memory_space<vmem>>, %arg8: memref<16x128xbf16, #tpu.memory_space<vmem>>) attributes {dimension_semantics = [#tpu.dimension_semantics<parallel>], iteration_bounds = array<i64: 1>, scalar_prefetch = 0 : i64, scratch_operands = 0 : i64, tpu.core_type = #tpu.core_type<tc>, window_params = [{transform_indices = @transform_0, window_bounds = array<i64: 16, 896>}, {pipeline_mode = #tpu.pipeline_mode<synchronous>, transform_indices = @transform_1, window_bounds = array<i64: 896, 512>}, {pipeline_mode = #tpu.pipeline_mode<synchronous>, transform_indices = @transform_2, window_bounds = array<i64: 1, 512>}, {pipeline_mode = #tpu.pipeline_mode<synchronous>, transform_indices = @transform_3, window_bounds = array<i64: 512, 512>}, {pipeline_mode = #tpu.pipeline_mode<synchronous>, transform_indices = @transform_4, window_bounds = array<i64: 1, 512>}, {pipeline_mode = #tpu.pipeline_mode<synchronous>, transform_indices = @transform_5, window_bounds = array<i64: 512, 128>}, {pipeline_mode = #tpu.pipeline_mode<synchronous>, transform_indices = @transform_6, window_bounds = array<i64: 1, 128>}, {transform_indices = @transform_7, window_bounds = array<i64: 16, 128>}]} {
    %c0 = arith.constant 0 : index
    %c0_0 = arith.constant 0 : index
    %0 = vector.load %arg1[%c0, %c0_0] : memref<16x896xbf16, #tpu.memory_space<vmem>>, vector<16x896xbf16>
    %c0_1 = arith.constant 0 : index
    %c0_2 = arith.constant 0 : index
    %1 = vector.load %arg2[%c0_1, %c0_2] : memref<896x512xbf16, #tpu.memory_space<vmem>>, vector<896x512xbf16>
    %cst = arith.constant dense<0.000000e+00> : vector<16x512xf32>
    %2 = tpu.matmul %0, %1, %cst {dimension_numbers = #tpu.dot_dimension_numbers<[1], [0], [0], [1], [0, 0, 1, 1], [], []>} : vector<16x896xbf16>, vector<896x512xbf16>, vector<16x512xf32> -> vector<16x512xf32>
    %c0_3 = arith.constant 0 : index
    %c0_4 = arith.constant 0 : index
    %3 = vector.load %arg3[%c0_3, %c0_4] : memref<1x512xf32, #tpu.memory_space<vmem>>, vector<1x512xf32>
    %4 = vector.broadcast %3 : vector<1x512xf32> to vector<16x512xf32>
    %5 = arith.addf %2, %4 : vector<16x512xf32>
    %cst_5 = arith.constant 0.000000e+00 : f32
    %6 = vector.broadcast %cst_5 : f32 to vector<16x512xf32>
    %7 = arith.maximumf %5, %6 : vector<16x512xf32>
    %8 = arith.truncf %7 : vector<16x512xf32> to vector<16x512xbf16>
    %c0_6 = arith.constant 0 : index
    %c0_7 = arith.constant 0 : index
    %9 = vector.load %arg4[%c0_6, %c0_7] : memref<512x512xbf16, #tpu.memory_space<vmem>>, vector<512x512xbf16>
    %cst_8 = arith.constant dense<0.000000e+00> : vector<16x512xf32>
    %10 = tpu.matmul %8, %9, %cst_8 {dimension_numbers = #tpu.dot_dimension_numbers<[1], [0], [0], [1], [0, 0, 1, 1], [], []>} : vector<16x512xbf16>, vector<512x512xbf16>, vector<16x512xf32> -> vector<16x512xf32>
    %c0_9 = arith.constant 0 : index
    %c0_10 = arith.constant 0 : index
    %11 = vector.load %arg5[%c0_9, %c0_10] : memref<1x512xf32, #tpu.memory_space<vmem>>, vector<1x512xf32>
    %12 = vector.broadcast %11 : vector<1x512xf32> to vector<16x512xf32>
    %13 = arith.addf %10, %12 : vector<16x512xf32>
    %cst_11 = arith.constant 0.000000e+00 : f32
    %14 = vector.broadcast %cst_11 : f32 to vector<16x512xf32>
    %15 = arith.maximumf %13, %14 : vector<16x512xf32>
    %16 = arith.truncf %15 : vector<16x512xf32> to vector<16x512xbf16>
    %c0_12 = arith.constant 0 : index
    %c0_13 = arith.constant 0 : index
    %17 = vector.load %arg6[%c0_12, %c0_13] : memref<512x128xbf16, #tpu.memory_space<vmem>>, vector<512x128xbf16>
    %cst_14 = arith.constant dense<0.000000e+00> : vector<16x128xf32>
    %18 = tpu.matmul %16, %17, %cst_14 {dimension_numbers = #tpu.dot_dimension_numbers<[1], [0], [0], [1], [0, 0, 1, 1], [], []>} : vector<16x512xbf16>, vector<512x128xbf16>, vector<16x128xf32> -> vector<16x128xf32>
    %c0_15 = arith.constant 0 : index
    %c0_16 = arith.constant 0 : index
    %19 = vector.load %arg7[%c0_15, %c0_16] : memref<1x128xf32, #tpu.memory_space<vmem>>, vector<1x128xf32>
    %20 = vector.broadcast %19 : vector<1x128xf32> to vector<16x128xf32>
    %21 = arith.addf %18, %20 : vector<16x128xf32>
    %cst_17 = arith.constant dense<0xFF800000> : vector<16xf32>
    %22 = vector.multi_reduction <maximumf>, %21, %cst_17 [1] : vector<16x128xf32> to vector<16xf32>
    %23 = vector.shape_cast %22 : vector<16xf32> to vector<16x1xf32>
    %24 = vector.broadcast %23 : vector<16x1xf32> to vector<16x128xf32>
    %25 = arith.subf %21, %24 : vector<16x128xf32>
    %26 = math.exp %25 : vector<16x128xf32>
    %cst_18 = arith.constant dense<0.000000e+00> : vector<16xf32>
    %27 = vector.multi_reduction <add>, %26, %cst_18 [1] : vector<16x128xf32> to vector<16xf32>
    %28 = vector.shape_cast %27 : vector<16xf32> to vector<16x1xf32>
    %29 = tpu.reciprocal %28 {approx = true} : vector<16x1xf32> -> vector<16x1xf32>
    %30 = vector.broadcast %29 : vector<16x1xf32> to vector<16x128xf32>
    %31 = arith.mulf %26, %30 : vector<16x128xf32>
    %32 = arith.truncf %31 : vector<16x128xf32> to vector<16x128xbf16>
    %c0_19 = arith.constant 0 : index
    %c0_20 = arith.constant 0 : index
    %33 = vector.load %arg8[%c0_19, %c0_20] : memref<16x128xbf16, #tpu.memory_space<vmem>>, vector<16x128xbf16>
    tpu.vector_store %arg8[%c0_19, %c0_20], %32 {strides = array<i32>} : memref<16x128xbf16, #tpu.memory_space<vmem>>, vector<16x128xbf16>,
    return
  }
  func.func @transform_0(%arg0: i32) -> (i32, i32) {
    %c0_i32 = arith.constant 0 : i32
    %c0_i32_0 = arith.constant 0 : i32
    return %arg0, %c0_i32 : i32, i32
  }
  func.func @transform_1(%arg0: i32) -> (i32, i32) {
    %c0_i32 = arith.constant 0 : i32
    %c0_i32_0 = arith.constant 0 : i32
    %c0_i32_1 = arith.constant 0 : i32
    return %c0_i32, %c0_i32_0 : i32, i32
  }
  func.func @transform_2(%arg0: i32) -> (i32, i32) {
    %c0_i32 = arith.constant 0 : i32
    %c0_i32_0 = arith.constant 0 : i32
    %c0_i32_1 = arith.constant 0 : i32
    return %c0_i32, %c0_i32_0 : i32, i32
  }
  func.func @transform_3(%arg0: i32) -> (i32, i32) {
    %c0_i32 = arith.constant 0 : i32
    %c0_i32_0 = arith.constant 0 : i32
    %c0_i32_1 = arith.constant 0 : i32
    return %c0_i32, %c0_i32_0 : i32, i32
  }
  func.func @transform_4(%arg0: i32) -> (i32, i32) {
    %c0_i32 = arith.constant 0 : i32
    %c0_i32_0 = arith.constant 0 : i32
    %c0_i32_1 = arith.constant 0 : i32
    return %c0_i32, %c0_i32_0 : i32, i32
  }
  func.func @transform_5(%arg0: i32) -> (i32, i32) {
    %c0_i32 = arith.constant 0 : i32
    %c0_i32_0 = arith.constant 0 : i32
    %c0_i32_1 = arith.constant 0 : i32
    return %c0_i32, %c0_i32_0 : i32, i32
  }
  func.func @transform_6(%arg0: i32) -> (i32, i32) {
    %c0_i32 = arith.constant 0 : i32
    %c0_i32_0 = arith.constant 0 : i32
    %c0_i32_1 = arith.constant 0 : i32
    return %c0_i32, %c0_i32_0 : i32, i32
  }
  func.func @transform_7(%arg0: i32) -> (i32, i32) {
    %c0_i32 = arith.constant 0 : i32
    %c0_i32_0 = arith.constant 0 : i32
    return %arg0, %c0_i32 : i32, i32
  }
}

</mosaic_0001>

<bundles_post_ra>
// kernel: tpu_custom_call.1
= control target key start
LH: loop header
LB: loop body
LE: loop exit
PB: predicated region body
PF: predicated region fallthrough
CT: control target
= control target key end

     0   :  { %12 = vsyncpa [#allocation3], 0  ;;  %s4582_s0 = inlined_call_operand.hbm [shape: bf16[16,896], index: 0, kind: input, shape index: {}]   ;;  %s4583_s1 = inlined_call_operand.hbm [shape: bf16[896,512], index: 1, kind: input, shape index: {}]   ;;  %s4584_s2 = inlined_call_operand.vmem [shape: f32[1,512], index: 2, kind: input, shape index: {}]   ;;  %s4585_s3 = inlined_call_operand.hbm [shape: bf16[512,512], index: 3, kind: input, shape index: {}]   ;;  %s4586_s4 = inlined_call_operand.vmem [shape: f32[1,512], index: 4, kind: input, shape index: {}]   ;;  %s4587_s5 = inlined_call_operand.hbm [shape: bf16[512,128], index: 5, kind: input, shape index: {}]   ;;  %s4588_s6 = inlined_call_operand.vmem [shape: f32[1,128], index: 6, kind: input, shape index: {}]   ;;  %s4589_s7 = inlined_call_operand.hbm [shape: bf16[16,128], index: 7, kind: output, shape index: {}]  }
   0x1   :  { %13 = vsyncpa [#allocation6], 0 }
   0x2   :  { %14 = vsyncpa [#allocation9], 0 }
   0x3   :  { %15 = vsyncpa [#allocation4], 0  ;;  %s4416_s24 = smov [#allocation5]   ;;  %s4298_s28 = scalar_lea.hbm %s4583_s1, 28672 }
   0x4   :  { %s33_s25 = sshll.u32 %s4416_s24, 4  ;;  %p4299_p0 = scmp.ne.s32.totalorder %s4583_s1, %s4298_s28  ;;  %s34_s25 = int_to_ptr.vmem [resolvable:$true] %s33_s25 }
   0x5   :  { %p4302_p1 = scmp.lt.u32.totalorder %s4298_s28, %s4583_s1 }
   0x7   :  { %p4304_p2 = pnand %p4302_p1, %p4299_p0 }
   0x9   :  { %4307 = shalt.err (!%p4304_p2)
}
   0xa   :  { %s4308_s10 = scalar_lea.vmem %s34_s25, 28672  ;;  %p4313_p4 = scmp.lt.s32.totalorder %s34_s25, %s34_s25 }
   0xb   :  { %p4309_p3 = scmp.ne.s32.totalorder %s34_s25, %s4308_s10  ;;  %p4314_p5 = scmp.lt.s32.totalorder %s4308_s10, %s4308_s10 }
   0xd   :  { %p4315_p6 = por %p4314_p5, %p4313_p4 }
   0xf   :  { %p4316_p7 = pnand %p4315_p6, %p4309_p3 }
  0x11   :  { %4319 = shalt.err (!%p4316_p7)
}
  0x12   :  { %s4417_s11 = smov 256   ;;  %s4418_s12 = smov 16  }
  0x13   :  { %39 = dma.hbm_to_vmem [thread:$0]  %s4583_s1, 28672, %s34_s25, [#allocation6], %s4417_s11, %s4417_s11, %s4418_s12  }
  0x14   :  { %s4419_s15 = smov [#allocation2]   ;;  %s4320_s19 = scalar_lea.hbm %s4582_s0, 896 }
  0x15   :  { %s21_s16 = sshll.u32 %s4419_s15, 4  ;;  %p4321_p8 = scmp.ne.s32.totalorder %s4582_s0, %s4320_s19  ;;  %s22_s16 = int_to_ptr.vmem [resolvable:$true] %s21_s16 }
  0x16   :  { %p4324_p9 = scmp.lt.u32.totalorder %s4320_s19, %s4582_s0 }
  0x18   :  { %p4326_p10 = pnand %p4324_p9, %p4321_p8 }
  0x1a   :  { %4329 = shalt.err (!%p4326_p10)
}
  0x1b   :  { %s4330_s24 = scalar_lea.vmem %s22_s16, 896  ;;  %p4335_p12 = scmp.lt.s32.totalorder %s22_s16, %s22_s16 }
  0x1c   :  { %p4331_p11 = scmp.ne.s32.totalorder %s22_s16, %s4330_s24  ;;  %p4336_p13 = scmp.lt.s32.totalorder %s4330_s24, %s4330_s24 }
  0x1e   :  { %p4337_p0 = por %p4336_p13, %p4335_p12 }
  0x20   :  { %p4338_p1 = pnand %p4337_p0, %p4331_p11 }
  0x22   :  { %4341 = shalt.err (!%p4338_p1)
}
  0x23   :  { %s4420_s1 = smov 448   ;;  %s4421_s25 = smov 28  }
  0x24   :  { %27 = dma.hbm_to_vmem [thread:$0]  %s4582_s0, 896, %s22_s16, [#allocation3], %s4420_s1, %s4420_s1, %s4421_s25  }
  0x25   :  { %s4422_s28 = smov [#allocation7]   ;;  %s4423_s30 = smov [#allocation8]  }
  0x26   :  { %s47_s29 = sshll.u32 %s4422_s28, 4  ;;  %s61_s8 = sshll.u32 %s4423_s30, 4  ;;  %s48_s29 = int_to_ptr.vmem [resolvable:$true] %s47_s29  ;;  %s4495_s8 = int_to_ptr.vmem [resolvable:$true] %s61_s8 }
  0x27   :  { %s4342_s13 = scalar_lea.hbm %s4585_s3, 16384 }
  0x28   :  { %p4343_p2 = scmp.ne.s32.totalorder %s4585_s3, %s4342_s13  ;;  %p4346_p3 = scmp.lt.u32.totalorder %s4342_s13, %s4585_s3 }
  0x2a   :  { %p4348_p4 = pnand %p4346_p3, %p4343_p2 }
  0x2c   :  { %4351 = shalt.err (!%p4348_p4)
}
  0x2d   :  { %s4352_s0 = scalar_lea.vmem %s48_s29, 16384  ;;  %p4357_p6 = scmp.lt.s32.totalorder %s48_s29, %s48_s29 }
  0x2e   :  { %p4353_p5 = scmp.ne.s32.totalorder %s48_s29, %s4352_s0  ;;  %p4358_p7 = scmp.lt.s32.totalorder %s4352_s0, %s4352_s0 }
  0x30   :  { %p4359_p8 = por %p4358_p7, %p4357_p6 }
  0x32   :  { %p4360_p9 = pnand %p4359_p8, %p4353_p5 }
  0x34   :  { %4363 = shalt.err (!%p4360_p9)
}
  0x35   :  { %53 = dma.hbm_to_vmem [thread:$0]  %s4585_s3, 16384, %s48_s29, [#allocation6], %s4417_s11, %s4417_s11, %s4418_s12  }
  0x36   :  { %s4364_s22 = scalar_lea.hbm %s4587_s5, 4096 }
  0x37   :  { %p4365_p10 = scmp.ne.s32.totalorder %s4587_s5, %s4364_s22  ;;  %p4368_p11 = scmp.lt.u32.totalorder %s4364_s22, %s4587_s5 }
  0x39   :  { %p4370_p12 = pnand %p4368_p11, %p4365_p10 }
  0x3b   :  { %4373 = shalt.err (!%p4370_p12)
}
  0x3c   :  { %s4374_s26 = scalar_lea.vmem %s4495_s8, 4096  ;;  %p4379_p0 = scmp.lt.s32.totalorder %s4495_s8, %s4495_s8 }
  0x3d   :  { %p4375_p13 = scmp.ne.s32.totalorder %s4495_s8, %s4374_s26  ;;  %p4380_p1 = scmp.lt.s32.totalorder %s4374_s26, %s4374_s26 }
  0x3f   :  { %p4381_p2 = por %p4380_p1, %p4379_p0 }
  0x41   :  { %p4382_p3 = pnand %p4381_p2, %p4375_p13 }
  0x43   :  { %4385 = shalt.err (!%p4382_p3)
}
  0x44   :  { %s4424_s3 = smov 64   ;;  %s4425_s11 = smov 4  }
  0x45   :  { %67 = dma.hbm_to_vmem [thread:$0]  %s4587_s5, 4096, %s4495_s8, [#allocation9], %s4424_s3, %s4424_s3, %s4425_s11  }
  0x46   :  { %4408 = dma.done.wait [#allocation3], 896  }
  0x47   :  { %4409 = vsyncadd [#allocation3], 4294966400 }
  0x48   :  { %4410 = dma.done.wait [#allocation6], 45056  }
  0x49   :  { %4411 = vsyncadd [#allocation6], 4294922240 }
  0x4a   :  { %4412 = dma.done.wait [#allocation9], 4096  }
  0x4b   :  { %4413 = vsyncadd [#allocation9], 4294963200  ;;  %v3720_v0 = vld [vmem:[#allocation5 + $0x4] ss:$16 sps:$4 sm:$0xff]   ;;  %v3722_v1 = vld [vmem:[#allocation5 + $0xc] ss:$16 sps:$4 sm:$0xff]  }
  0x4c   :  { %1493 = vmatprep.subr.bf16.mxu0 %v3720_v0  ;;  %v3724_v2 = vld [vmem:[#allocation5] ss:$16 sps:$4 sm:$0xff]   ;;  %v3725_v3 = vld [vmem:[#allocation5 + $0x8] ss:$16 sps:$4 sm:$0xff]   ;;  %1665 = vmatprep.subr.bf16.mxu1 %v3722_v1  ;;  %v3726_v4 = vld [vmem:[#allocation5 + $0x24] ss:$16 sps:$4 sm:$0xff]  }
  0x4d   :  { %1494 = vmatpush1.bf16.msra.mxu0 %v3724_v2  ;;  %1666 = vmatpush1.bf16.msra.mxu1 %v3725_v3  ;;  %v3728_v5 = vld [vmem:[#allocation5 + $0x2c] ss:$16 sps:$4 sm:$0xff]   ;;  %v3730_v6 = vld [vmem:[#allocation5 + $0x20] ss:$16 sps:$4 sm:$0xff]   ;;  %v3731_v7 = vld [vmem:[#allocation5 + $0x28] ss:$16 sps:$4 sm:$0xff]  }
  0x4e   :  { %1495 = vmatprep.subr.bf16.mxu0 %v3726_v4  ;;  %1667 = vmatprep.subr.bf16.mxu1 %v3728_v5  ;;  %v3732_v8 = vld [vmem:[#allocation5 + $0x44] ss:$16 sps:$4 sm:$0xff]   ;;  %v3734_v9 = vld [vmem:[#allocation5 + $0x4c] ss:$16 sps:$4 sm:$0xff]   ;;  %v3736_v10 = vld [vmem:[#allocation5 + $0x40] ss:$16 sps:$4 sm:$0xff]  }
  0x4f   :  { %v3737_v11 = vld [vmem:[#allocation5 + $0x48] ss:$16 sps:$4 sm:$0xff]   ;;  %v3738_v12 = vld [vmem:[#allocation5 + $0x64] ss:$16 sps:$4 sm:$0xff]   ;;  %v3740_v13 = vld [vmem:[#allocation5 + $0x6c] ss:$16 sps:$4 sm:$0xff]  }
  0x50   :  { %v3742_v14 = vld [vmem:[#allocation5 + $0x60] ss:$16 sps:$4 sm:$0xff]   ;;  %v3743_v15 = vld [vmem:[#allocation5 + $0x68] ss:$16 sps:$4 sm:$0xff]   ;;  %v3744_v16 = vld [vmem:[#allocation5 + $0x84] ss:$16 sps:$4 sm:$0xff]  }
  0x51   :  { %1496 = vmatpush1.bf16.msra.mxu0 %v3730_v6  ;;  %1668 = vmatpush1.bf16.msra.mxu1 %v3731_v7  ;;  %v3746_v17 = vld [vmem:[#allocation5 + $0x8c] ss:$16 sps:$4 sm:$0xff]   ;;  %v3748_v18 = vld [vmem:[#allocation5 + $0x80] ss:$16 sps:$4 sm:$0xff]   ;;  %v3749_v19 = vld [vmem:[#allocation5 + $0x88] ss:$16 sps:$4 sm:$0xff]  }
  0x52   :  { %1497 = vmatprep.subr.bf16.mxu0 %v3732_v8  ;;  %1669 = vmatprep.subr.bf16.mxu1 %v3734_v9  ;;  %v3750_v20 = vld [vmem:[#allocation5 + $0xa4] ss:$16 sps:$4 sm:$0xff]   ;;  %v3752_v21 = vld [vmem:[#allocation5 + $0xac] ss:$16 sps:$4 sm:$0xff]   ;;  %v3754_v22 = vld [vmem:[#allocation5 + $0xa0] ss:$16 sps:$4 sm:$0xff]  }
  0x53   :  { %v3755_v23 = vld [vmem:[#allocation5 + $0xa8] ss:$16 sps:$4 sm:$0xff]   ;;  %v3756_v24 = vld [vmem:[#allocation5 + $0xc4] ss:$16 sps:$4 sm:$0xff]   ;;  %v3758_v25 = vld [vmem:[#allocation5 + $0xcc] ss:$16 sps:$4 sm:$0xff]  }
  0x54   :  { %v3760_v26 = vld [vmem:[#allocation5 + $0xc0] ss:$16 sps:$4 sm:$0xff]   ;;  %v3761_v27 = vld [vmem:[#allocation5 + $0xc8] ss:$16 sps:$4 sm:$0xff]   ;;  %v3762_v28 = vld [vmem:[#allocation5 + $0xe4] ss:$16 sps:$4 sm:$0xff]  }
  0x55   :  { %1498 = vmatpush1.bf16.msra.mxu0 %v3736_v10  ;;  %1670 = vmatpush1.bf16.msra.mxu1 %v3737_v11  ;;  %v3764_v29 = vld [vmem:[#allocation5 + $0xec] ss:$16 sps:$4 sm:$0xff]   ;;  %v3766_v30 = vld [vmem:[#allocation5 + $0xe0] ss:$16 sps:$4 sm:$0xff]   ;;  %v3767_v31 = vld [vmem:[#allocation5 + $0xe8] ss:$16 sps:$4 sm:$0xff]  }
  0x56   :  { %1499 = vmatprep.subr.bf16.mxu0 %v3738_v12  ;;  %1671 = vmatprep.subr.bf16.mxu1 %v3740_v13  ;;  %v3768_v32 = vld [vmem:[#allocation5 + $0x104] ss:$16 sps:$4 sm:$0xff]   ;;  %v3770_v33 = vld [vmem:[#allocation5 + $0x10c] ss:$16 sps:$4 sm:$0xff]   ;;  %v3772_v34 = vld [vmem:[#allocation5 + $0x100] ss:$16 sps:$4 sm:$0xff]  }
  0x57   :  { %v3773_v35 = vld [vmem:[#allocation5 + $0x108] ss:$16 sps:$4 sm:$0xff]   ;;  %v3774_v36 = vld [vmem:[#allocation5 + $0x124] ss:$16 sps:$4 sm:$0xff]   ;;  %v3776_v37 = vld [vmem:[#allocation5 + $0x12c] ss:$16 sps:$4 sm:$0xff]  }
  0x58   :  { %v3778_v38 = vld [vmem:[#allocation5 + $0x120] ss:$16 sps:$4 sm:$0xff]   ;;  %v3779_v39 = vld [vmem:[#allocation5 + $0x128] ss:$16 sps:$4 sm:$0xff]   ;;  %v3780_v40 = vld [vmem:[#allocation5 + $0x144] ss:$16 sps:$4 sm:$0xff]  }
  0x59   :  { %1500 = vmatpush1.bf16.msra.mxu0 %v3742_v14  ;;  %1672 = vmatpush1.bf16.msra.mxu1 %v3743_v15  ;;  %v3782_v41 = vld [vmem:[#allocation5 + $0x14c] ss:$16 sps:$4 sm:$0xff]   ;;  %v3784_v42 = vld [vmem:[#allocation5 + $0x140] ss:$16 sps:$4 sm:$0xff]   ;;  %v3785_v43 = vld [vmem:[#allocation5 + $0x148] ss:$16 sps:$4 sm:$0xff]  }
  0x5a   :  { %1501 = vmatprep.subr.bf16.mxu0 %v3744_v16  ;;  %1673 = vmatprep.subr.bf16.mxu1 %v3746_v17  ;;  %v3786_v44 = vld [vmem:[#allocation5 + $0x164] ss:$16 sps:$4 sm:$0xff]   ;;  %v3788_v45 = vld [vmem:[#allocation5 + $0x16c] ss:$16 sps:$4 sm:$0xff]   ;;  %v3790_v46 = vld [vmem:[#allocation5 + $0x160] ss:$16 sps:$4 sm:$0xff]  }
  0x5b   :  { %v3791_v47 = vld [vmem:[#allocation5 + $0x168] ss:$16 sps:$4 sm:$0xff]   ;;  %v3792_v49 = vld [vmem:[#allocation5 + $0x184] ss:$16 sps:$4 sm:$0xff]   ;;  %v3794_v50 = vld [vmem:[#allocation5 + $0x18c] ss:$16 sps:$4 sm:$0xff]  }
  0x5c   :  { %v3818_v48 = vld [vmem:[#allocation2 + $0x4] ss:$28 sps:$4 sm:$0xff]   ;;  %v3796_v51 = vld [vmem:[#allocation5 + $0x180] ss:$16 sps:$4 sm:$0xff]   ;;  %v3798_v53 = vld [vmem:[#allocation5 + $0x1a4] ss:$16 sps:$4 sm:$0xff]  }
  0x5d   :  { %1502 = vmatpush1.bf16.msra.mxu0 %v3748_v18  ;;  %1674 = vmatpush1.bf16.msra.mxu1 %v3749_v19  ;;  %v3797_v52 = vld [vmem:[#allocation5 + $0x188] ss:$16 sps:$4 sm:$0xff]   ;;  %v3800_v54 = vld [vmem:[#allocation5 + $0x1ac] ss:$16 sps:$4 sm:$0xff]   ;;  %v3802_v55 = vld [vmem:[#allocation5 + $0x1a0] ss:$16 sps:$4 sm:$0xff]  }
  0x5e   :  { %1503 = vmatprep.subr.bf16.mxu0 %v3750_v20  ;;  %1675 = vmatprep.subr.bf16.mxu1 %v3752_v21  ;;  %v3803_v56 = vld [vmem:[#allocation5 + $0x1a8] ss:$16 sps:$4 sm:$0xff]   ;;  %v3804_v57 = vld [vmem:[#allocation5 + $0x1c4] ss:$16 sps:$4 sm:$0xff]   ;;  %v3806_v58 = vld [vmem:[#allocation5 + $0x1cc] ss:$16 sps:$4 sm:$0xff]  }
  0x5f   :  { %1525 = vmatprep.mubr.bf16.mxu0 %v3818_v48  ;;  %1697 = vmatprep.mubr.bf16.mxu1 %v3818_v48  ;;  %v3808_v59 = vld [vmem:[#allocation5 + $0x1c0] ss:$16 sps:$4 sm:$0xff]   ;;  %v3809_v60 = vld [vmem:[#allocation5 + $0x1c8] ss:$16 sps:$4 sm:$0xff]   ;;  %v3810_v61 = vld [vmem:[#allocation5 + $0x1e4] ss:$16 sps:$4 sm:$0xff]  }
  0x60   :  { %v3812_v62 = vld [vmem:[#allocation5 + $0x1ec] ss:$16 sps:$4 sm:$0xff]   ;;  %v3814_v63 = vld [vmem:[#allocation5 + $0x1e0] ss:$16 sps:$4 sm:$0xff]   ;;  %v3815_v0 = vld [vmem:[#allocation5 + $0x1e8] ss:$16 sps:$4 sm:$0xff]  }
  0x61   :  { %1504 = vmatpush1.bf16.msra.mxu0 %v3754_v22  ;;  %1676 = vmatpush1.bf16.msra.mxu1 %v3755_v23  ;;  %v3821_v1 = vld [vmem:[#allocation5 + $0x204] ss:$16 sps:$4 sm:$0xff]   ;;  %v3824_v2 = vld [vmem:[#allocation5 + $0x20c] ss:$16 sps:$4 sm:$0xff]   ;;  %v3819_v4 = vld [vmem:[#allocation5 + $0x200] ss:$16 sps:$4 sm:$0xff]  }
  0x62   :  { %1505 = vmatprep.subr.bf16.mxu0 %v3756_v24  ;;  %1677 = vmatprep.subr.bf16.mxu1 %v3758_v25  ;;  %v3816_v3 = vld [vmem:[#allocation2] ss:$28 sps:$4 sm:$0xff]   ;;  %v3830_v7 = vld [vmem:[#allocation5 + $0x22c] ss:$16 sps:$4 sm:$0xff]   ;;  %v3825_v8 = vld [vmem:[#allocation5 + $0x220] ss:$16 sps:$4 sm:$0xff]  }
  0x63   :  { %v3822_v5 = vld [vmem:[#allocation5 + $0x208] ss:$16 sps:$4 sm:$0xff]   ;;  %v3827_v6 = vld [vmem:[#allocation5 + $0x224] ss:$16 sps:$4 sm:$0xff]   ;;  %v3836_v11 = vld [vmem:[#allocation5 + $0x24c] ss:$16 sps:$4 sm:$0xff]  }
  0x64   :  { %v3828_v9 = vld [vmem:[#allocation5 + $0x228] ss:$16 sps:$4 sm:$0xff]   ;;  %v3833_v10 = vld [vmem:[#allocation5 + $0x244] ss:$16 sps:$4 sm:$0xff]   ;;  %v3831_v12 = vld [vmem:[#allocation5 + $0x240] ss:$16 sps:$4 sm:$0xff]  }
  0x65   :  { %1506 = vmatpush1.bf16.msra.mxu0 %v3760_v26  ;;  %1678 = vmatpush1.bf16.msra.mxu1 %v3761_v27  ;;  %v3834_v13 = vld [vmem:[#allocation5 + $0x248] ss:$16 sps:$4 sm:$0xff]   ;;  %v3839_v14 = vld [vmem:[#allocation5 + $0x264] ss:$16 sps:$4 sm:$0xff]   ;;  %v3842_v15 = vld [vmem:[#allocation5 + $0x26c] ss:$16 sps:$4 sm:$0xff]  }
  0x66   :  { %1507 = vmatprep.subr.bf16.mxu0 %v3762_v28  ;;  %1679 = vmatprep.subr.bf16.mxu1 %v3764_v29  ;;  %v3837_v16 = vld [vmem:[#allocation5 + $0x260] ss:$16 sps:$4 sm:$0xff]   ;;  %v3840_v17 = vld [vmem:[#allocation5 + $0x268] ss:$16 sps:$4 sm:$0xff]   ;;  %v3845_v18 = vld [vmem:[#allocation5 + $0x284] ss:$16 sps:$4 sm:$0xff]  }
  0x67   :  { %v3848_v19 = vld [vmem:[#allocation5 + $0x28c] ss:$16 sps:$4 sm:$0xff]   ;;  %v3843_v20 = vld [vmem:[#allocation5 + $0x280] ss:$16 sps:$4 sm:$0xff]   ;;  %v3846_v21 = vld [vmem:[#allocation5 + $0x288] ss:$16 sps:$4 sm:$0xff]  }
  0x68   :  { %v3851_v22 = vld [vmem:[#allocation5 + $0x2a4] ss:$16 sps:$4 sm:$0xff]   ;;  %v3854_v23 = vld [vmem:[#allocation5 + $0x2ac] ss:$16 sps:$4 sm:$0xff]   ;;  %v3849_v24 = vld [vmem:[#allocation5 + $0x2a0] ss:$16 sps:$4 sm:$0xff]  }
  0x69   :  { %1508 = vmatpush1.bf16.msra.mxu0 %v3766_v30  ;;  %1680 = vmatpush1.bf16.msra.mxu1 %v3767_v31  ;;  %v3852_v25 = vld [vmem:[#allocation5 + $0x2a8] ss:$16 sps:$4 sm:$0xff]   ;;  %v3857_v26 = vld [vmem:[#allocation5 + $0x2c4] ss:$16 sps:$4 sm:$0xff]   ;;  %v3860_v27 = vld [vmem:[#allocation5 + $0x2cc] ss:$16 sps:$4 sm:$0xff]  }
  0x6a   :  { %1509 = vmatprep.subr.bf16.mxu0 %v3768_v32  ;;  %1681 = vmatprep.subr.bf16.mxu1 %v3770_v33  ;;  %v3855_v28 = vld [vmem:[#allocation5 + $0x2c0] ss:$16 sps:$4 sm:$0xff]   ;;  %v3858_v29 = vld [vmem:[#allocation5 + $0x2c8] ss:$16 sps:$4 sm:$0xff]   ;;  %v3863_v31 = vld [vmem:[#allocation5 + $0x2e4] ss:$16 sps:$4 sm:$0xff]  }
  0x6b   :  { %v3917_v30 = vld [vmem:[#allocation2 + $0xc] ss:$28 sps:$4 sm:$0xff]   ;;  %v3866_v32 = vld [vmem:[#allocation5 + $0x2ec] ss:$16 sps:$4 sm:$0xff]  }
  0x6c   :  { %v3861_v33 = vld [vmem:[#allocation5 + $0x2e0] ss:$16 sps:$4 sm:$0xff]   ;;  %v3890_v48 = vld [vmem:[#allocation5 + $0x36c] ss:$16 sps:$4 sm:$0xff]  }
  0x6d   :  { %1510 = vmatpush1.bf16.msra.mxu0 %v3772_v34  ;;  %1682 = vmatpush1.bf16.msra.mxu1 %v3773_v35  ;;  %v3864_v34 = vld [vmem:[#allocation5 + $0x2e8] ss:$16 sps:$4 sm:$0xff]   ;;  %v3869_v35 = vld [vmem:[#allocation5 + $0x304] ss:$16 sps:$4 sm:$0xff]  }
  0x6e   :  { %1511 = vmatprep.subr.bf16.mxu0 %v3774_v36  ;;  %1683 = vmatprep.subr.bf16.mxu1 %v3776_v37  ;;  %v3872_v36 = vld [vmem:[#allocation5 + $0x30c] ss:$16 sps:$4 sm:$0xff]   ;;  %v3867_v37 = vld [vmem:[#allocation5 + $0x300] ss:$16 sps:$4 sm:$0xff]  }
  0x71   :  { %1512 = vmatpush1.bf16.msra.mxu0 %v3778_v38  ;;  %1684 = vmatpush1.bf16.msra.mxu1 %v3779_v39  ;;  %v3870_v38 = vld [vmem:[#allocation5 + $0x308] ss:$16 sps:$4 sm:$0xff]   ;;  %v3875_v39 = vld [vmem:[#allocation5 + $0x324] ss:$16 sps:$4 sm:$0xff]  }
  0x72   :  { %1513 = vmatprep.subr.bf16.mxu0 %v3780_v40  ;;  %1685 = vmatprep.subr.bf16.mxu1 %v3782_v41  ;;  %v3878_v40 = vld [vmem:[#allocation5 + $0x32c] ss:$16 sps:$4 sm:$0xff]   ;;  %v3873_v41 = vld [vmem:[#allocation5 + $0x320] ss:$16 sps:$4 sm:$0xff]  }
  0x75   :  { %1514 = vmatpush1.bf16.msra.mxu0 %v3784_v42  ;;  %1686 = vmatpush1.bf16.msra.mxu1 %v3785_v43  ;;  %v3876_v42 = vld [vmem:[#allocation5 + $0x328] ss:$16 sps:$4 sm:$0xff]   ;;  %v3881_v43 = vld [vmem:[#allocation5 + $0x344] ss:$16 sps:$4 sm:$0xff]  }
  0x76   :  { %1515 = vmatprep.subr.bf16.mxu0 %v3786_v44  ;;  %1687 = vmatprep.subr.bf16.mxu1 %v3788_v45  ;;  %v3884_v44 = vld [vmem:[#allocation5 + $0x34c] ss:$16 sps:$4 sm:$0xff]   ;;  %v3879_v45 = vld [vmem:[#allocation5 + $0x340] ss:$16 sps:$4 sm:$0xff]  }
  0x79   :  { %1516 = vmatpush1.bf16.msra.mxu0 %v3790_v46  ;;  %1688 = vmatpush1.bf16.msra.mxu1 %v3791_v47  ;;  %v3882_v46 = vld [vmem:[#allocation5 + $0x348] ss:$16 sps:$4 sm:$0xff]   ;;  %v3887_v47 = vld [vmem:[#allocation5 + $0x364] ss:$16 sps:$4 sm:$0xff]  }
  0x7a   :  { %1517 = vmatprep.subr.bf16.mxu0 %v3792_v49  ;;  %1689 = vmatprep.subr.bf16.mxu1 %v3794_v50  ;;  %v3885_v49 = vld [vmem:[#allocation5 + $0x360] ss:$16 sps:$4 sm:$0xff]   ;;  %v3888_v50 = vld [vmem:[#allocation5 + $0x368] ss:$16 sps:$4 sm:$0xff]  }
  0x7d   :  { %1518 = vmatpush1.bf16.msra.mxu0 %v3796_v51  ;;  %1690 = vmatpush1.bf16.msra.mxu1 %v3797_v52  ;;  %v3893_v51 = vld [vmem:[#allocation5 + $0x384] ss:$16 sps:$4 sm:$0xff]   ;;  %v3896_v52 = vld [vmem:[#allocation5 + $0x38c] ss:$16 sps:$4 sm:$0xff]  }
  0x7e   :  { %1519 = vmatprep.subr.bf16.mxu0 %v3798_v53  ;;  %1691 = vmatprep.subr.bf16.mxu1 %v3800_v54  ;;  %v3891_v53 = vld [vmem:[#allocation5 + $0x380] ss:$16 sps:$4 sm:$0xff]   ;;  %v3894_v54 = vld [vmem:[#allocation5 + $0x388] ss:$16 sps:$4 sm:$0xff]  }
  0x81   :  { %1520 = vmatpush1.bf16.msra.mxu0 %v3802_v55  ;;  %1692 = vmatpush1.bf16.msra.mxu1 %v3803_v56  ;;  %v3899_v55 = vld [vmem:[#allocation5 + $0x3a4] ss:$16 sps:$4 sm:$0xff]   ;;  %v3902_v56 = vld [vmem:[#allocation5 + $0x3ac] ss:$16 sps:$4 sm:$0xff]  }
  0x82   :  { %1521 = vmatprep.subr.bf16.mxu0 %v3804_v57  ;;  %1693 = vmatprep.subr.bf16.mxu1 %v3806_v58  ;;  %v3897_v57 = vld [vmem:[#allocation5 + $0x3a0] ss:$16 sps:$4 sm:$0xff]   ;;  %v3900_v58 = vld [vmem:[#allocation5 + $0x3a8] ss:$16 sps:$4 sm:$0xff]  }
  0x85   :  { %1522 = vmatpush1.bf16.msra.mxu0 %v3808_v59  ;;  %1694 = vmatpush1.bf16.msra.mxu1 %v3809_v60  ;;  %v3905_v59 = vld [vmem:[#allocation5 + $0x3c4] ss:$16 sps:$4 sm:$0xff]   ;;  %v3908_v60 = vld [vmem:[#allocation5 + $0x3cc] ss:$16 sps:$4 sm:$0xff]  }
  0x86   :  { %1523 = vmatprep.subr.bf16.mxu0 %v3810_v61  ;;  %1695 = vmatprep.subr.bf16.mxu1 %v3812_v62  ;;  %v3903_v61 = vld [vmem:[#allocation5 + $0x3c0] ss:$16 sps:$4 sm:$0xff]   ;;  %v3906_v62 = vld [vmem:[#allocation5 + $0x3c8] ss:$16 sps:$4 sm:$0xff]  }
  0x89   :  { %1524 = vmatpush1.bf16.msra.mxu0 %v3814_v63  ;;  %1696 = vmatpush1.bf16.msra.mxu1 %v3815_v0  ;;  %v3911_v63 = vld [vmem:[#allocation5 + $0x3e4] ss:$16 sps:$4 sm:$0xff]   ;;  %v3914_v0 = vld [vmem:[#allocation5 + $0x3ec] ss:$16 sps:$4 sm:$0xff]  }
  0x8a   :  { %1536 = vmatprep.subr.bf16.mxu0 %v3821_v1  ;;  %1708 = vmatprep.subr.bf16.mxu1 %v3824_v2  ;;  %v3909_v1 = vld [vmem:[#allocation5 + $0x3e0] ss:$16 sps:$4 sm:$0xff]   ;;  %v3912_v2 = vld [vmem:[#allocation5 + $0x3e8] ss:$16 sps:$4 sm:$0xff]  }
  0x8c   :  { %1526 = vmatmul.mubr.bf16.vlgmr.msra.gmra.mrb[0].mxu0 %v3816_v3  ;;  %1698 = vmatmul.mubr.bf16.vlgmr.msra.gmra.mrb[0].mxu1 %v3816_v3  ;;  %v3920_v3 = vld [vmem:[#allocation5 + $0x404] ss:$16 sps:$4 sm:$0xff]  }
  0x8d   :  { %1537 = vmatpush1.bf16.msra.mxu0 %v3819_v4  ;;  %1709 = vmatpush1.bf16.msra.mxu1 %v3822_v5  ;;  %v3923_v4 = vld [vmem:[#allocation5 + $0x40c] ss:$16 sps:$4 sm:$0xff]  }
  0x8e   :  { %1538 = vmatprep.subr.bf16.mxu0 %v3827_v6  ;;  %1710 = vmatprep.subr.bf16.mxu1 %v3830_v7  ;;  %v3915_v5 = vld [vmem:[#allocation2 + $0x8] ss:$28 sps:$4 sm:$0xff]   ;;  %v3921_v7 = vld [vmem:[#allocation5 + $0x408] ss:$16 sps:$4 sm:$0xff]  }
  0x8f   :  { %1568 = vmatprep.mubr.bf16.mxu0 %v3917_v30  ;;  %1740 = vmatprep.mubr.bf16.mxu1 %v3917_v30  ;;  %v3918_v6 = vld [vmem:[#allocation5 + $0x400] ss:$16 sps:$4 sm:$0xff]   ;;  %v3959_v30 = vld [vmem:[#allocation5 + $0x4cc] ss:$16 sps:$4 sm:$0xff]  }
  0x91   :  { %1539 = vmatpush1.bf16.msra.mxu0 %v3825_v8  ;;  %1711 = vmatpush1.bf16.msra.mxu1 %v3828_v9  ;;  %v3926_v8 = vld [vmem:[#allocation5 + $0x424] ss:$16 sps:$4 sm:$0xff]   ;;  %v3929_v9 = vld [vmem:[#allocation5 + $0x42c] ss:$16 sps:$4 sm:$0xff]  }
  0x92   :  { %1540 = vmatprep.subr.bf16.mxu0 %v3833_v10  ;;  %1712 = vmatprep.subr.bf16.mxu1 %v3836_v11  ;;  %v3924_v10 = vld [vmem:[#allocation5 + $0x420] ss:$16 sps:$4 sm:$0xff]   ;;  %v3927_v11 = vld [vmem:[#allocation5 + $0x428] ss:$16 sps:$4 sm:$0xff]  }
  0x95   :  { %1541 = vmatpush1.bf16.msra.mxu0 %v3831_v12  ;;  %1713 = vmatpush1.bf16.msra.mxu1 %v3834_v13  ;;  %v4016_v12 = vld [vmem:[#allocation2 + $0x14] ss:$28 sps:$4 sm:$0xff]   ;;  %v3932_v13 = vld [vmem:[#allocation5 + $0x444] ss:$16 sps:$4 sm:$0xff]  }
  0x96   :  { %1542 = vmatprep.subr.bf16.mxu0 %v3839_v14  ;;  %1714 = vmatprep.subr.bf16.mxu1 %v3842_v15  ;;  %v3935_v14 = vld [vmem:[#allocation5 + $0x44c] ss:$16 sps:$4 sm:$0xff]   ;;  %v3930_v15 = vld [vmem:[#allocation5 + $0x440] ss:$16 sps:$4 sm:$0xff]  }
  0x99   :  { %1543 = vmatpush1.bf16.msra.mxu0 %v3837_v16  ;;  %1715 = vmatpush1.bf16.msra.mxu1 %v3840_v17  ;;  %v3933_v16 = vld [vmem:[#allocation5 + $0x448] ss:$16 sps:$4 sm:$0xff]   ;;  %v3938_v17 = vld [vmem:[#allocation5 + $0x464] ss:$16 sps:$4 sm:$0xff]  }
  0x9a   :  { %1544 = vmatprep.subr.bf16.mxu0 %v3845_v18  ;;  %1716 = vmatprep.subr.bf16.mxu1 %v3848_v19  ;;  %v3941_v18 = vld [vmem:[#allocation5 + $0x46c] ss:$16 sps:$4 sm:$0xff]   ;;  %v3936_v19 = vld [vmem:[#allocation5 + $0x460] ss:$16 sps:$4 sm:$0xff]  }
  0x9d   :  { %1545 = vmatpush1.bf16.msra.mxu0 %v3843_v20  ;;  %1717 = vmatpush1.bf16.msra.mxu1 %v3846_v21  ;;  %v3939_v20 = vld [vmem:[#allocation5 + $0x468] ss:$16 sps:$4 sm:$0xff]   ;;  %v3944_v21 = vld [vmem:[#allocation5 + $0x484] ss:$16 sps:$4 sm:$0xff]  }
  0x9e   :  { %1546 = vmatprep.subr.bf16.mxu0 %v3851_v22  ;;  %1718 = vmatprep.subr.bf16.mxu1 %v3854_v23  ;;  %v3947_v22 = vld [vmem:[#allocation5 + $0x48c] ss:$16 sps:$4 sm:$0xff]   ;;  %v3942_v23 = vld [vmem:[#allocation5 + $0x480] ss:$16 sps:$4 sm:$0xff]  }
  0xa1   :  { %1547 = vmatpush1.bf16.msra.mxu0 %v3849_v24  ;;  %1719 = vmatpush1.bf16.msra.mxu1 %v3852_v25  ;;  %v3945_v24 = vld [vmem:[#allocation5 + $0x488] ss:$16 sps:$4 sm:$0xff]   ;;  %v3950_v25 = vld [vmem:[#allocation5 + $0x4a4] ss:$16 sps:$4 sm:$0xff]  }
  0xa2   :  { %1548 = vmatprep.subr.bf16.mxu0 %v3857_v26  ;;  %1720 = vmatprep.subr.bf16.mxu1 %v3860_v27  ;;  %v3953_v26 = vld [vmem:[#allocation5 + $0x4ac] ss:$16 sps:$4 sm:$0xff]   ;;  %v3948_v27 = vld [vmem:[#allocation5 + $0x4a0] ss:$16 sps:$4 sm:$0xff]  }
  0xa5   :  { %1549 = vmatpush1.bf16.msra.mxu0 %v3855_v28  ;;  %1721 = vmatpush1.bf16.msra.mxu1 %v3858_v29  ;;  %v3951_v28 = vld [vmem:[#allocation5 + $0x4a8] ss:$16 sps:$4 sm:$0xff]   ;;  %v3956_v29 = vld [vmem:[#allocation5 + $0x4c4] ss:$16 sps:$4 sm:$0xff]  }
  0xa6   :  { %1550 = vmatprep.subr.bf16.mxu0 %v3863_v31  ;;  %1722 = vmatprep.subr.bf16.mxu1 %v3866_v32  ;;  %v3954_v31 = vld [vmem:[#allocation5 + $0x4c0] ss:$16 sps:$4 sm:$0xff]   ;;  %v3957_v32 = vld [vmem:[#allocation5 + $0x4c8] ss:$16 sps:$4 sm:$0xff]  }
  0xa9   :  { %1551 = vmatpush1.bf16.msra.mxu0 %v3861_v33  ;;  %1723 = vmatpush1.bf16.msra.mxu1 %v3864_v34  ;;  %v3962_v33 = vld [vmem:[#allocation5 + $0x4e4] ss:$16 sps:$4 sm:$0xff]   ;;  %v3965_v34 = vld [vmem:[#allocation5 + $0x4ec] ss:$16 sps:$4 sm:$0xff]  }
  0xaa   :  { %1552 = vmatprep.subr.bf16.mxu0 %v3869_v35  ;;  %1724 = vmatprep.subr.bf16.mxu1 %v3872_v36  ;;  %v3960_v35 = vld [vmem:[#allocation5 + $0x4e0] ss:$16 sps:$4 sm:$0xff]   ;;  %v3963_v36 = vld [vmem:[#allocation5 + $0x4e8] ss:$16 sps:$4 sm:$0xff]  }
  0xad   :  { %1553 = vmatpush1.bf16.msra.mxu0 %v3867_v37  ;;  %1725 = vmatpush1.bf16.msra.mxu1 %v3870_v38  ;;  %v3968_v37 = vld [vmem:[#allocation5 + $0x504] ss:$16 sps:$4 sm:$0xff]   ;;  %v3971_v38 = vld [vmem:[#allocation5 + $0x50c] ss:$16 sps:$4 sm:$0xff]  }
  0xae   :  { %1554 = vmatprep.subr.bf16.mxu0 %v3875_v39  ;;  %1726 = vmatprep.subr.bf16.mxu1 %v3878_v40  ;;  %v3966_v39 = vld [vmem:[#allocation5 + $0x500] ss:$16 sps:$4 sm:$0xff]   ;;  %v3969_v40 = vld [vmem:[#allocation5 + $0x508] ss:$16 sps:$4 sm:$0xff]  }
  0xb1   :  { %1555 = vmatpush1.bf16.msra.mxu0 %v3873_v41  ;;  %1727 = vmatpush1.bf16.msra.mxu1 %v3876_v42  ;;  %v3974_v41 = vld [vmem:[#allocation5 + $0x524] ss:$16 sps:$4 sm:$0xff]   ;;  %v3977_v42 = vld [vmem:[#allocation5 + $0x52c] ss:$16 sps:$4 sm:$0xff]  }
  0xb2   :  { %1556 = vmatprep.subr.bf16.mxu0 %v3881_v43  ;;  %1728 = vmatprep.subr.bf16.mxu1 %v3884_v44  ;;  %v3972_v43 = vld [vmem:[#allocation5 + $0x520] ss:$16 sps:$4 sm:$0xff]   ;;  %v3975_v44 = vld [vmem:[#allocation5 + $0x528] ss:$16 sps:$4 sm:$0xff]  }
  0xb5   :  { %1557 = vmatpush1.bf16.msra.mxu0 %v3879_v45  ;;  %1729 = vmatpush1.bf16.msra.mxu1 %v3882_v46  ;;  %v3980_v45 = vld [vmem:[#allocation5 + $0x544] ss:$16 sps:$4 sm:$0xff]   ;;  %v3983_v46 = vld [vmem:[#allocation5 + $0x54c] ss:$16 sps:$4 sm:$0xff]  }
  0xb6   :  { %1558 = vmatprep.subr.bf16.mxu0 %v3887_v47  ;;  %1730 = vmatprep.subr.bf16.mxu1 %v3890_v48  ;;  %v3978_v47 = vld [vmem:[#allocation5 + $0x540] ss:$16 sps:$4 sm:$0xff]   ;;  %v3981_v48 = vld [vmem:[#allocation5 + $0x548] ss:$16 sps:$4 sm:$0xff]  }
  0xb9   :  { %1559 = vmatpush1.bf16.msra.mxu0 %v3885_v49  ;;  %1731 = vmatpush1.bf16.msra.mxu1 %v3888_v50  ;;  %v3986_v49 = vld [vmem:[#allocation5 + $0x564] ss:$16 sps:$4 sm:$0xff]   ;;  %v3989_v50 = vld [vmem:[#allocation5 + $0x56c] ss:$16 sps:$4 sm:$0xff]  }
  0xba   :  { %1560 = vmatprep.subr.bf16.mxu0 %v3893_v51  ;;  %1732 = vmatprep.subr.bf16.mxu1 %v3896_v52  ;;  %v3984_v51 = vld [vmem:[#allocation5 + $0x560] ss:$16 sps:$4 sm:$0xff]   ;;  %v3987_v52 = vld [vmem:[#allocation5 + $0x568] ss:$16 sps:$4 sm:$0xff]  }
  0xbd   :  { %1561 = vmatpush1.bf16.msra.mxu0 %v3891_v53  ;;  %1733 = vmatpush1.bf16.msra.mxu1 %v3894_v54  ;;  %v3992_v53 = vld [vmem:[#allocation5 + $0x584] ss:$16 sps:$4 sm:$0xff]   ;;  %v3995_v54 = vld [vmem:[#allocation5 + $0x58c] ss:$16 sps:$4 sm:$0xff]  }
  0xbe   :  { %1562 = vmatprep.subr.bf16.mxu0 %v3899_v55  ;;  %1734 = vmatprep.subr.bf16.mxu1 %v3902_v56  ;;  %v3990_v55 = vld [vmem:[#allocation5 + $0x580] ss:$16 sps:$4 sm:$0xff]   ;;  %v3993_v56 = vld [vmem:[#allocation5 + $0x588] ss:$16 sps:$4 sm:$0xff]  }
  0xc1   :  { %1563 = vmatpush1.bf16.msra.mxu0 %v3897_v57  ;;  %1735 = vmatpush1.bf16.msra.mxu1 %v3900_v58  ;;  %v3998_v57 = vld [vmem:[#allocation5 + $0x5a4] ss:$16 sps:$4 sm:$0xff]   ;;  %v4001_v58 = vld [vmem:[#allocation5 + $0x5ac] ss:$16 sps:$4 sm:$0xff]  }
  0xc2   :  { %1564 = vmatprep.subr.bf16.mxu0 %v3905_v59  ;;  %1736 = vmatprep.subr.bf16.mxu1 %v3908_v60  ;;  %v3996_v59 = vld [vmem:[#allocation5 + $0x5a0] ss:$16 sps:$4 sm:$0xff]   ;;  %v3999_v60 = vld [vmem:[#allocation5 + $0x5a8] ss:$16 sps:$4 sm:$0xff]  }
  0xc5   :  { %1565 = vmatpush1.bf16.msra.mxu0 %v3903_v61  ;;  %1737 = vmatpush1.bf16.msra.mxu1 %v3906_v62  ;;  %v4004_v61 = vld [vmem:[#allocation5 + $0x5c4] ss:$16 sps:$4 sm:$0xff]   ;;  %v4007_v62 = vld [vmem:[#allocation5 + $0x5cc] ss:$16 sps:$4 sm:$0xff]  }
  0xc6   :  { %1566 = vmatprep.subr.bf16.mxu0 %v3911_v63  ;;  %1738 = vmatprep.subr.bf16.mxu1 %v3914_v0  ;;  %v4002_v63 = vld [vmem:[#allocation5 + $0x5c0] ss:$16 sps:$4 sm:$0xff]   ;;  %v4005_v0 = vld [vmem:[#allocation5 + $0x5c8] ss:$16 sps:$4 sm:$0xff]  }
  0xc9   :  { %1567 = vmatpush1.bf16.msra.mxu0 %v3909_v1  ;;  %1739 = vmatpush1.bf16.msra.mxu1 %v3912_v2  ;;  %v4010_v1 = vld [vmem:[#allocation5 + $0x5e4] ss:$16 sps:$4 sm:$0xff]   ;;  %v4013_v2 = vld [vmem:[#allocation5 + $0x5ec] ss:$16 sps:$4 sm:$0xff]  }
  0xca   :  { %1579 = vmatprep.subr.bf16.mxu0 %v3920_v3  ;;  %1751 = vmatprep.subr.bf16.mxu1 %v3923_v4  ;;  %v4008_v3 = vld [vmem:[#allocation5 + $0x5e0] ss:$16 sps:$4 sm:$0xff]   ;;  %v4011_v4 = vld [vmem:[#allocation5 + $0x5e8] ss:$16 sps:$4 sm:$0xff]  }
  0xcc   :  { %1569 = vmatmul.mubr.bf16.vlgmr.msra.gmra.mrb[0].mxu0 %v3915_v5  ;;  %1741 = vmatmul.mubr.bf16.vlgmr.msra.gmra.mrb[0].mxu1 %v3915_v5  ;;  %v4019_v5 = vld [vmem:[#allocation5 + $0x604] ss:$16 sps:$4 sm:$0xff]  }
  0xcd   :  { %1580 = vmatpush1.bf16.msra.mxu0 %v3918_v6  ;;  %1752 = vmatpush1.bf16.msra.mxu1 %v3921_v7  ;;  %v4014_v6 = vld [vmem:[#allocation2 + $0x10] ss:$28 sps:$4 sm:$0xff]   ;;  %v4022_v7 = vld [vmem:[#allocation5 + $0x60c] ss:$16 sps:$4 sm:$0xff]  }
  0xce   :  { %1581 = vmatprep.subr.bf16.mxu0 %v3926_v8  ;;  %1753 = vmatprep.subr.bf16.mxu1 %v3929_v9  ;;  %v4017_v8 = vld [vmem:[#allocation5 + $0x600] ss:$16 sps:$4 sm:$0xff]   ;;  %v4020_v9 = vld [vmem:[#allocation5 + $0x608] ss:$16 sps:$4 sm:$0xff]  }
  0xcf   :  { %1611 = vmatprep.mubr.bf16.mxu0 %v4016_v12  ;;  %1783 = vmatprep.mubr.bf16.mxu1 %v4016_v12  ;;  %v4023_v12 = vld [vmem:[#allocation5 + $0x620] ss:$16 sps:$4 sm:$0xff]  }
  0xd1   :  { %1582 = vmatpush1.bf16.msra.mxu0 %v3924_v10  ;;  %1754 = vmatpush1.bf16.msra.mxu1 %v3927_v11  ;;  %v4025_v10 = vld [vmem:[#allocation5 + $0x624] ss:$16 sps:$4 sm:$0xff]   ;;  %v4028_v11 = vld [vmem:[#allocation5 + $0x62c] ss:$16 sps:$4 sm:$0xff]  }
  0xd2   :  { %1583 = vmatprep.subr.bf16.mxu0 %v3932_v13  ;;  %1755 = vmatprep.subr.bf16.mxu1 %v3935_v14  ;;  %v4026_v13 = vld [vmem:[#allocation5 + $0x628] ss:$16 sps:$4 sm:$0xff]   ;;  %v4031_v14 = vld [vmem:[#allocation5 + $0x644] ss:$16 sps:$4 sm:$0xff]  }
  0xd5   :  { %1584 = vmatpush1.bf16.msra.mxu0 %v3930_v15  ;;  %1756 = vmatpush1.bf16.msra.mxu1 %v3933_v16  ;;  %v4034_v15 = vld [vmem:[#allocation5 + $0x64c] ss:$16 sps:$4 sm:$0xff]   ;;  %v4029_v16 = vld [vmem:[#allocation5 + $0x640] ss:$16 sps:$4 sm:$0xff]  }
  0xd6   :  { %1585 = vmatprep.subr.bf16.mxu0 %v3938_v17  ;;  %1757 = vmatprep.subr.bf16.mxu1 %v3941_v18  ;;  %v4032_v17 = vld [vmem:[#allocation5 + $0x648] ss:$16 sps:$4 sm:$0xff]   ;;  %v4426_v18 = vmov 0  }
  0xd9   :  { %1586 = vmatpush1.bf16.msra.mxu0 %v3936_v19  ;;  %1758 = vmatpush1.bf16.msra.mxu1 %v3939_v20  ;;  %v4037_v19 = vld [vmem:[#allocation5 + $0x664] ss:$16 sps:$4 sm:$0xff]   ;;  %v4040_v20 = vld [vmem:[#allocation5 + $0x66c] ss:$16 sps:$4 sm:$0xff]  }
  0xda   :  { %1587 = vmatprep.subr.bf16.mxu0 %v3944_v21  ;;  %1759 = vmatprep.subr.bf16.mxu1 %v3947_v22  ;;  %v4035_v21 = vld [vmem:[#allocation5 + $0x660] ss:$16 sps:$4 sm:$0xff]   ;;  %v4038_v22 = vld [vmem:[#allocation5 + $0x668] ss:$16 sps:$4 sm:$0xff]  }
  0xdd   :  { %1588 = vmatpush1.bf16.msra.mxu0 %v3942_v23  ;;  %1760 = vmatpush1.bf16.msra.mxu1 %v3945_v24  ;;  %v4043_v23 = vld [vmem:[#allocation5 + $0x684] ss:$16 sps:$4 sm:$0xff]   ;;  %v4046_v24 = vld [vmem:[#allocation5 + $0x68c] ss:$16 sps:$4 sm:$0xff]  }
  0xde   :  { %1589 = vmatprep.subr.bf16.mxu0 %v3950_v25  ;;  %1761 = vmatprep.subr.bf16.mxu1 %v3953_v26  ;;  %v4041_v25 = vld [vmem:[#allocation5 + $0x680] ss:$16 sps:$4 sm:$0xff]   ;;  %v4044_v26 = vld [vmem:[#allocation5 + $0x688] ss:$16 sps:$4 sm:$0xff]  }
  0xe1   :  { %1590 = vmatpush1.bf16.msra.mxu0 %v3948_v27  ;;  %1762 = vmatpush1.bf16.msra.mxu1 %v3951_v28  ;;  %v4049_v27 = vld [vmem:[#allocation5 + $0x6a4] ss:$16 sps:$4 sm:$0xff]   ;;  %v4052_v28 = vld [vmem:[#allocation5 + $0x6ac] ss:$16 sps:$4 sm:$0xff]  }
  0xe2   :  { %1591 = vmatprep.subr.bf16.mxu0 %v3956_v29  ;;  %1763 = vmatprep.subr.bf16.mxu1 %v3959_v30  ;;  %v4047_v29 = vld [vmem:[#allocation5 + $0x6a0] ss:$16 sps:$4 sm:$0xff]   ;;  %v4050_v30 = vld [vmem:[#allocation5 + $0x6a8] ss:$16 sps:$4 sm:$0xff]  }
  0xe5   :  { %1592 = vmatpush1.bf16.msra.mxu0 %v3954_v31  ;;  %1764 = vmatpush1.bf16.msra.mxu1 %v3957_v32  ;;  %v4055_v31 = vld [vmem:[#allocation5 + $0x6c4] ss:$16 sps:$4 sm:$0xff]   ;;  %v4058_v32 = vld [vmem:[#allocation5 + $0x6cc] ss:$16 sps:$4 sm:$0xff]  }
  0xe6   :  { %1593 = vmatprep.subr.bf16.mxu0 %v3962_v33  ;;  %1765 = vmatprep.subr.bf16.mxu1 %v3965_v34  ;;  %v4053_v33 = vld [vmem:[#allocation5 + $0x6c0] ss:$16 sps:$4 sm:$0xff]   ;;  %v4056_v34 = vld [vmem:[#allocation5 + $0x6c8] ss:$16 sps:$4 sm:$0xff]  }
  0xe9   :  { %1594 = vmatpush1.bf16.msra.mxu0 %v3960_v35  ;;  %1766 = vmatpush1.bf16.msra.mxu1 %v3963_v36  ;;  %v4061_v35 = vld [vmem:[#allocation5 + $0x6e4] ss:$16 sps:$4 sm:$0xff]   ;;  %v4064_v36 = vld [vmem:[#allocation5 + $0x6ec] ss:$16 sps:$4 sm:$0xff]  }
  0xea   :  { %1595 = vmatprep.subr.bf16.mxu0 %v3968_v37  ;;  %1767 = vmatprep.subr.bf16.mxu1 %v3971_v38  ;;  %v4059_v37 = vld [vmem:[#allocation5 + $0x6e0] ss:$16 sps:$4 sm:$0xff]   ;;  %v4062_v38 = vld [vmem:[#allocation5 + $0x6e8] ss:$16 sps:$4 sm:$0xff]  }
  0xed   :  { %1596 = vmatpush1.bf16.msra.mxu0 %v3966_v39  ;;  %1768 = vmatpush1.bf16.msra.mxu1 %v3969_v40  ;;  %v4068_v39 = vld [vmem:[#allocation7 + $0x4] ss:$16 sps:$4 sm:$0xff]   ;;  %v4071_v40 = vld [vmem:[#allocation7 + $0xc] ss:$16 sps:$4 sm:$0xff]  }
  0xee   :  { %1597 = vmatprep.subr.bf16.mxu0 %v3974_v41  ;;  %1769 = vmatprep.subr.bf16.mxu1 %v3977_v42  ;;  %v4065_v41 = vld [vmem:[#allocation2 + $0x18] ss:$28 sps:$4 sm:$0xff]  }
  0xef   :  { %v4066_v42 = vld [vmem:[#allocation7] ss:$16 sps:$4 sm:$0xff]  }
  0xf1   :  { %1598 = vmatpush1.bf16.msra.mxu0 %v3972_v43  ;;  %1770 = vmatpush1.bf16.msra.mxu1 %v3975_v44  ;;  %v4069_v43 = vld [vmem:[#allocation7 + $0x8] ss:$16 sps:$4 sm:$0xff]   ;;  %v4074_v44 = vld [vmem:[#allocation7 + $0x24] ss:$16 sps:$4 sm:$0xff]  }
  0xf2   :  { %1599 = vmatprep.subr.bf16.mxu0 %v3980_v45  ;;  %1771 = vmatprep.subr.bf16.mxu1 %v3983_v46  ;;  %v4077_v45 = vld [vmem:[#allocation7 + $0x2c] ss:$16 sps:$4 sm:$0xff]   ;;  %v4072_v46 = vld [vmem:[#allocation7 + $0x20] ss:$16 sps:$4 sm:$0xff]  }
  0xf5   :  { %1600 = vmatpush1.bf16.msra.mxu0 %v3978_v47  ;;  %1772 = vmatpush1.bf16.msra.mxu1 %v3981_v48  ;;  %v4075_v47 = vld [vmem:[#allocation7 + $0x28] ss:$16 sps:$4 sm:$0xff]   ;;  %v4080_v48 = vld [vmem:[#allocation7 + $0x44] ss:$16 sps:$4 sm:$0xff]  }
  0xf6   :  { %1601 = vmatprep.subr.bf16.mxu0 %v3986_v49  ;;  %1773 = vmatprep.subr.bf16.mxu1 %v3989_v50  ;;  %v4083_v49 = vld [vmem:[#allocation7 + $0x4c] ss:$16 sps:$4 sm:$0xff]   ;;  %v4078_v50 = vld [vmem:[#allocation7 + $0x40] ss:$16 sps:$4 sm:$0xff]  }
  0xf9   :  { %1602 = vmatpush1.bf16.msra.mxu0 %v3984_v51  ;;  %1774 = vmatpush1.bf16.msra.mxu1 %v3987_v52  ;;  %v4081_v51 = vld [vmem:[#allocation7 + $0x48] ss:$16 sps:$4 sm:$0xff]   ;;  %v4086_v52 = vld [vmem:[#allocation7 + $0x64] ss:$16 sps:$4 sm:$0xff]  }
  0xfa   :  { %1603 = vmatprep.subr.bf16.mxu0 %v3992_v53  ;;  %1775 = vmatprep.subr.bf16.mxu1 %v3995_v54  ;;  %v4089_v53 = vld [vmem:[#allocation7 + $0x6c] ss:$16 sps:$4 sm:$0xff]   ;;  %v4084_v54 = vld [vmem:[#allocation7 + $0x60] ss:$16 sps:$4 sm:$0xff]  }
  0xfd   :  { %1604 = vmatpush1.bf16.msra.mxu0 %v3990_v55  ;;  %1776 = vmatpush1.bf16.msra.mxu1 %v3993_v56  ;;  %v4087_v55 = vld [vmem:[#allocation7 + $0x68] ss:$16 sps:$4 sm:$0xff]   ;;  %v4092_v56 = vld [vmem:[#allocation7 + $0x84] ss:$16 sps:$4 sm:$0xff]  }
  0xfe   :  { %1605 = vmatprep.subr.bf16.mxu0 %v3998_v57  ;;  %1777 = vmatprep.subr.bf16.mxu1 %v4001_v58  ;;  %v4095_v57 = vld [vmem:[#allocation7 + $0x8c] ss:$16 sps:$4 sm:$0xff]   ;;  %v4090_v58 = vld [vmem:[#allocation7 + $0x80] ss:$16 sps:$4 sm:$0xff]  }
 0x101   :  { %1606 = vmatpush1.bf16.msra.mxu0 %v3996_v59  ;;  %1778 = vmatpush1.bf16.msra.mxu1 %v3999_v60  ;;  %v4093_v59 = vld [vmem:[#allocation7 + $0x88] ss:$16 sps:$4 sm:$0xff]   ;;  %v4098_v60 = vld [vmem:[#allocation7 + $0xa4] ss:$16 sps:$4 sm:$0xff]  }
 0x102   :  { %1607 = vmatprep.subr.bf16.mxu0 %v4004_v61  ;;  %1779 = vmatprep.subr.bf16.mxu1 %v4007_v62  ;;  %v4101_v61 = vld [vmem:[#allocation7 + $0xac] ss:$16 sps:$4 sm:$0xff]   ;;  %v4096_v62 = vld [vmem:[#allocation7 + $0xa0] ss:$16 sps:$4 sm:$0xff]  }
 0x105   :  { %1608 = vmatpush1.bf16.msra.mxu0 %v4002_v63  ;;  %1780 = vmatpush1.bf16.msra.mxu1 %v4005_v0  ;;  %v4099_v63 = vld [vmem:[#allocation7 + $0xa8] ss:$16 sps:$4 sm:$0xff]   ;;  %v4104_v0 = vld [vmem:[#allocation7 + $0xc4] ss:$16 sps:$4 sm:$0xff]  }
 0x106   :  { %1609 = vmatprep.subr.bf16.mxu0 %v4010_v1  ;;  %1781 = vmatprep.subr.bf16.mxu1 %v4013_v2  ;;  %v4107_v1 = vld [vmem:[#allocation7 + $0xcc] ss:$16 sps:$4 sm:$0xff]   ;;  %v4102_v2 = vld [vmem:[#allocation7 + $0xc0] ss:$16 sps:$4 sm:$0xff]  }
 0x109   :  { %1610 = vmatpush1.bf16.msra.mxu0 %v4008_v3  ;;  %1782 = vmatpush1.bf16.msra.mxu1 %v4011_v4  ;;  %v4105_v3 = vld [vmem:[#allocation7 + $0xc8] ss:$16 sps:$4 sm:$0xff]   ;;  %v4110_v4 = vld [vmem:[#allocation7 + $0xe4] ss:$16 sps:$4 sm:$0xff]  }
 0x10a   :  { %1622 = vmatprep.subr.bf16.mxu0 %v4019_v5  ;;  %1794 = vmatprep.subr.bf16.mxu1 %v4022_v7  ;;  %v4113_v5 = vld [vmem:[#allocation7 + $0xec] ss:$16 sps:$4 sm:$0xff]   ;;  %v4111_v7 = vld [vmem:[#allocation7 + $0xe8] ss:$16 sps:$4 sm:$0xff]  }
 0x10c   :  { %1612 = vmatmul.mubr.bf16.vlgmr.msra.gmra.mrb[0].mxu0 %v4014_v6  ;;  %1784 = vmatmul.mubr.bf16.vlgmr.msra.gmra.mrb[0].mxu1 %v4014_v6  ;;  %v4108_v6 = vld [vmem:[#allocation7 + $0xe0] ss:$16 sps:$4 sm:$0xff]  }
 0x10d   :  { %1623 = vmatpush1.bf16.msra.mxu0 %v4017_v8  ;;  %1795 = vmatpush1.bf16.msra.mxu1 %v4020_v9  ;;  %v4116_v8 = vld [vmem:[#allocation7 + $0x104] ss:$16 sps:$4 sm:$0xff]   ;;  %v4119_v9 = vld [vmem:[#allocation7 + $0x10c] ss:$16 sps:$4 sm:$0xff]  }
 0x10e   :  { %1624 = vmatprep.subr.bf16.mxu0 %v4025_v10  ;;  %1796 = vmatprep.subr.bf16.mxu1 %v4028_v11  ;;  %v4114_v10 = vld [vmem:[#allocation7 + $0x100] ss:$16 sps:$4 sm:$0xff]   ;;  %v4117_v11 = vld [vmem:[#allocation7 + $0x108] ss:$16 sps:$4 sm:$0xff]  }
 0x10f   :  { %1654 = vmatprep.mubr.bf16.mxu0 %v4426_v18  ;;  %1826 = vmatprep.mubr.bf16.mxu1 %v4426_v18  ;;  %v4126_v18 = vld [vmem:[#allocation7 + $0x140] ss:$16 sps:$4 sm:$0xff]  }
 0x111   :  { %1625 = vmatpush1.bf16.msra.mxu0 %v4023_v12  ;;  %1797 = vmatpush1.bf16.msra.mxu1 %v4026_v13  ;;  %v4122_v12 = vld [vmem:[#allocation7 + $0x124] ss:$16 sps:$4 sm:$0xff]   ;;  %v4125_v13 = vld [vmem:[#allocation7 + $0x12c] ss:$16 sps:$4 sm:$0xff]  }
 0x112   :  { %1626 = vmatprep.subr.bf16.mxu0 %v4031_v14  ;;  %1798 = vmatprep.subr.bf16.mxu1 %v4034_v15  ;;  %v4120_v14 = vld [vmem:[#allocation7 + $0x120] ss:$16 sps:$4 sm:$0xff]   ;;  %v4123_v15 = vld [vmem:[#allocation7 + $0x128] ss:$16 sps:$4 sm:$0xff]  }
 0x115   :  { %1627 = vmatpush1.bf16.msra.mxu0 %v4029_v16  ;;  %1799 = vmatpush1.bf16.msra.mxu1 %v4032_v17  ;;  %v4128_v16 = vld [vmem:[#allocation7 + $0x144] ss:$16 sps:$4 sm:$0xff]   ;;  %v4131_v17 = vld [vmem:[#allocation7 + $0x14c] ss:$16 sps:$4 sm:$0xff]  }
 0x116   :  { %1628 = vmatprep.subr.bf16.mxu0 %v4037_v19  ;;  %1800 = vmatprep.subr.bf16.mxu1 %v4040_v20  ;;  %v4129_v19 = vld [vmem:[#allocation7 + $0x148] ss:$16 sps:$4 sm:$0xff]   ;;  %v4134_v20 = vld [vmem:[#allocation7 + $0x164] ss:$16 sps:$4 sm:$0xff]  }
 0x119   :  { %1629 = vmatpush1.bf16.msra.mxu0 %v4035_v21  ;;  %1801 = vmatpush1.bf16.msra.mxu1 %v4038_v22  ;;  %v4137_v21 = vld [vmem:[#allocation7 + $0x16c] ss:$16 sps:$4 sm:$0xff]   ;;  %v4132_v22 = vld [vmem:[#allocation7 + $0x160] ss:$16 sps:$4 sm:$0xff]  }
 0x11a   :  { %1630 = vmatprep.subr.bf16.mxu0 %v4043_v23  ;;  %1802 = vmatprep.subr.bf16.mxu1 %v4046_v24  ;;  %v4135_v23 = vld [vmem:[#allocation7 + $0x168] ss:$16 sps:$4 sm:$0xff]   ;;  %v4140_v24 = vld [vmem:[#allocation7 + $0x184] ss:$16 sps:$4 sm:$0xff]  }
 0x11d   :  { %1631 = vmatpush1.bf16.msra.mxu0 %v4041_v25  ;;  %1803 = vmatpush1.bf16.msra.mxu1 %v4044_v26  ;;  %v4143_v25 = vld [vmem:[#allocation7 + $0x18c] ss:$16 sps:$4 sm:$0xff]   ;;  %v4138_v26 = vld [vmem:[#allocation7 + $0x180] ss:$16 sps:$4 sm:$0xff]  }
 0x11e   :  { %1632 = vmatprep.subr.bf16.mxu0 %v4049_v27  ;;  %1804 = vmatprep.subr.bf16.mxu1 %v4052_v28  ;;  %v4141_v27 = vld [vmem:[#allocation7 + $0x188] ss:$16 sps:$4 sm:$0xff]   ;;  %v4146_v28 = vld [vmem:[#allocation7 + $0x1a4] ss:$16 sps:$4 sm:$0xff]  }
 0x121   :  { %1633 = vmatpush1.bf16.msra.mxu0 %v4047_v29  ;;  %1805 = vmatpush1.bf16.msra.mxu1 %v4050_v30  ;;  %v4149_v29 = vld [vmem:[#allocation7 + $0x1ac] ss:$16 sps:$4 sm:$0xff]   ;;  %v4144_v30 = vld [vmem:[#allocation7 + $0x1a0] ss:$16 sps:$4 sm:$0xff]  }
 0x122   :  { %1634 = vmatprep.subr.bf16.mxu0 %v4055_v31  ;;  %1806 = vmatprep.subr.bf16.mxu1 %v4058_v32  ;;  %v4147_v31 = vld [vmem:[#allocation7 + $0x1a8] ss:$16 sps:$4 sm:$0xff]   ;;  %v4152_v32 = vld [vmem:[#allocation7 + $0x1c4] ss:$16 sps:$4 sm:$0xff]  }
 0x125   :  { %1635 = vmatpush1.bf16.msra.mxu0 %v4053_v33  ;;  %1807 = vmatpush1.bf16.msra.mxu1 %v4056_v34  ;;  %v4155_v33 = vld [vmem:[#allocation7 + $0x1cc] ss:$16 sps:$4 sm:$0xff]   ;;  %v4150_v34 = vld [vmem:[#allocation7 + $0x1c0] ss:$16 sps:$4 sm:$0xff]  }
 0x126   :  { %1636 = vmatprep.subr.bf16.mxu0 %v4061_v35  ;;  %1808 = vmatprep.subr.bf16.mxu1 %v4064_v36  ;;  %v4153_v35 = vld [vmem:[#allocation7 + $0x1c8] ss:$16 sps:$4 sm:$0xff]   ;;  %v4158_v36 = vld [vmem:[#allocation7 + $0x1e4] ss:$16 sps:$4 sm:$0xff]  }
 0x129   :  { %1637 = vmatpush1.bf16.msra.mxu0 %v4059_v37  ;;  %1809 = vmatpush1.bf16.msra.mxu1 %v4062_v38  ;;  %v4161_v37 = vld [vmem:[#allocation7 + $0x1ec] ss:$16 sps:$4 sm:$0xff]   ;;  %v4156_v38 = vld [vmem:[#allocation7 + $0x1e0] ss:$16 sps:$4 sm:$0xff]  }
 0x12a   :  { %2639 = vmatprep.subr.bf16.mxu0 %v4068_v39  ;;  %2725 = vmatprep.subr.bf16.mxu1 %v4071_v40  ;;  %v4159_v39 = vld [vmem:[#allocation7 + $0x1e8] ss:$16 sps:$4 sm:$0xff]   ;;  %v4164_v40 = vld [vmem:[#allocation7 + $0x204] ss:$16 sps:$4 sm:$0xff]  }
 0x12c   :  { %1655 = vmatmul.mubr.bf16.vlgmr.msra.gmra.mrb[0].mxu0 %v4065_v41  ;;  %1827 = vmatmul.mubr.bf16.vlgmr.msra.gmra.mrb[0].mxu1 %v4065_v41  ;;  %v4167_v41 = vld [vmem:[#allocation7 + $0x20c] ss:$16 sps:$4 sm:$0xff]  }
 0x12d   :  { %2640 = vmatpush1.bf16.msra.mxu0 %v4066_v42  ;;  %2726 = vmatpush1.bf16.msra.mxu1 %v4069_v43  ;;  %v317_v42 = vlaneseq }
 0x12e   :  { %2641 = vmatprep.subr.bf16.mxu0 %v4074_v44  ;;  %2727 = vmatprep.subr.bf16.mxu1 %v4077_v45 }
 0x12f   :  { %v4532_v43 = vshrl.u32 %v317_v42, 7  ;;  %v4201_v42 = vld [vmem:[#allocation7 + $0x2c8] ss:$16 sps:$4 sm:$0xff]  }
 0x131   :  { %2642 = vmatpush1.bf16.msra.mxu0 %v4072_v46  ;;  %2728 = vmatpush1.bf16.msra.mxu1 %v4075_v47  ;;  %v319_v44 = vsub.s32 0, %v4532_v43  ;;  %v327_v45 = vsub.s32 2, %v4532_v43  ;;  %v315_v46 = vld [vmem:[%s4584_s2] sm:$0xf]  ;;  %v323_v47 = vsub.s32 1, %v4532_v43 }
 0x132   :  { %2643 = vmatprep.subr.bf16.mxu0 %v4080_v48  ;;  %2729 = vmatprep.subr.bf16.mxu1 %v4083_v49  ;;  %v331_v48 = vsub.s32 3, %v4532_v43 }
 0x133   :  { %v320_v49 = vrot.slane %v315_v46, %v319_v44 }
 0x135   :  { %2644 = vmatpush1.bf16.msra.mxu0 %v4078_v50  ;;  %2730 = vmatpush1.bf16.msra.mxu1 %v4081_v51  ;;  %v328_v50 = vrot.slane %v315_v46, %v327_v45  ;;  %v324_v51 = vrot.slane %v315_v46, %v323_v47 }
 0x136   :  { %2645 = vmatprep.subr.bf16.mxu0 %v4086_v52  ;;  %2731 = vmatprep.subr.bf16.mxu1 %v4089_v53  ;;  %v332_v52 = vrot.slane %v315_v46, %v331_v48  ;;  %v4206_v46 = vld [vmem:[#allocation7 + $0x2e4] ss:$16 sps:$4 sm:$0xff]  }
 0x139   :  { %2646 = vmatpush1.bf16.msra.mxu0 %v4084_v54  ;;  %2732 = vmatpush1.bf16.msra.mxu1 %v4087_v55 }
 0x13a   :  { %2647 = vmatprep.subr.bf16.mxu0 %v4092_v56  ;;  %2733 = vmatprep.subr.bf16.mxu1 %v4095_v57 }
 0x13d   :  { %2648 = vmatpush1.bf16.msra.mxu0 %v4090_v58  ;;  %2734 = vmatpush1.bf16.msra.mxu1 %v4093_v59 }
 0x13e   :  { %2649 = vmatprep.subr.bf16.mxu0 %v4098_v60  ;;  %2735 = vmatprep.subr.bf16.mxu1 %v4101_v61 }
 0x141   :  { %2650 = vmatpush1.bf16.msra.mxu0 %v4096_v62  ;;  %2736 = vmatpush1.bf16.msra.mxu1 %v4099_v63 }
 0x142   :  { %2651 = vmatprep.subr.bf16.mxu0 %v4104_v0  ;;  %2737 = vmatprep.subr.bf16.mxu1 %v4107_v1 }
 0x145   :  { %2652 = vmatpush1.bf16.msra.mxu0 %v4102_v2  ;;  %2738 = vmatpush1.bf16.msra.mxu1 %v4105_v3 }
 0x146   :  { %2653 = vmatprep.subr.bf16.mxu0 %v4110_v4  ;;  %2739 = vmatprep.subr.bf16.mxu1 %v4113_v5 }
 0x149   :  { %2654 = vmatpush1.bf16.msra.mxu0 %v4108_v6  ;;  %2740 = vmatpush1.bf16.msra.mxu1 %v4111_v7 }
 0x14a   :  { %2655 = vmatprep.subr.bf16.mxu0 %v4116_v8  ;;  %2741 = vmatprep.subr.bf16.mxu1 %v4119_v9 }
 0x14d   :  { %2656 = vmatpush1.bf16.msra.mxu0 %v4114_v10  ;;  %2742 = vmatpush1.bf16.msra.mxu1 %v4117_v11 }
 0x14e   :  { %2657 = vmatprep.subr.bf16.mxu0 %v4122_v12  ;;  %2743 = vmatprep.subr.bf16.mxu1 %v4125_v13 }
 0x151   :  { %2658 = vmatpush1.bf16.msra.mxu0 %v4120_v14  ;;  %2744 = vmatpush1.bf16.msra.mxu1 %v4123_v15 }
 0x152   :  { %2659 = vmatprep.subr.bf16.mxu0 %v4128_v16  ;;  %2745 = vmatprep.subr.bf16.mxu1 %v4131_v17  ;;  %v4162_v17 = vld [vmem:[#allocation7 + $0x200] ss:$16 sps:$4 sm:$0xff]  }
 0x155   :  { %2660 = vmatpush1.bf16.msra.mxu0 %v4126_v18  ;;  %2746 = vmatpush1.bf16.msra.mxu1 %v4129_v19  ;;  %v4165_v18 = vld [vmem:[#allocation7 + $0x208] ss:$16 sps:$4 sm:$0xff]   ;;  %v4170_v19 = vld [vmem:[#allocation7 + $0x224] ss:$16 sps:$4 sm:$0xff]  }
 0x156   :  { %2661 = vmatprep.subr.bf16.mxu0 %v4134_v20  ;;  %2747 = vmatprep.subr.bf16.mxu1 %v4137_v21  ;;  %v4173_v20 = vld [vmem:[#allocation7 + $0x22c] ss:$16 sps:$4 sm:$0xff]   ;;  %v4168_v21 = vld [vmem:[#allocation7 + $0x220] ss:$16 sps:$4 sm:$0xff]  }
 0x159   :  { %2662 = vmatpush1.bf16.msra.mxu0 %v4132_v22  ;;  %2748 = vmatpush1.bf16.msra.mxu1 %v4135_v23  ;;  %v4171_v22 = vld [vmem:[#allocation7 + $0x228] ss:$16 sps:$4 sm:$0xff]   ;;  %v4176_v23 = vld [vmem:[#allocation7 + $0x244] ss:$16 sps:$4 sm:$0xff]  }
 0x15a   :  { %2663 = vmatprep.subr.bf16.mxu0 %v4140_v24  ;;  %2749 = vmatprep.subr.bf16.mxu1 %v4143_v25  ;;  %v4179_v24 = vld [vmem:[#allocation7 + $0x24c] ss:$16 sps:$4 sm:$0xff]   ;;  %v4174_v25 = vld [vmem:[#allocation7 + $0x240] ss:$16 sps:$4 sm:$0xff]  }
 0x15d   :  { %2664 = vmatpush1.bf16.msra.mxu0 %v4138_v26  ;;  %2750 = vmatpush1.bf16.msra.mxu1 %v4141_v27  ;;  %v4177_v26 = vld [vmem:[#allocation7 + $0x248] ss:$16 sps:$4 sm:$0xff]   ;;  %v4182_v27 = vld [vmem:[#allocation7 + $0x264] ss:$16 sps:$4 sm:$0xff]  }
 0x15e   :  { %2665 = vmatprep.subr.bf16.mxu0 %v4146_v28  ;;  %2751 = vmatprep.subr.bf16.mxu1 %v4149_v29  ;;  %v4185_v28 = vld [vmem:[#allocation7 + $0x26c] ss:$16 sps:$4 sm:$0xff]   ;;  %v4180_v29 = vld [vmem:[#allocation7 + $0x260] ss:$16 sps:$4 sm:$0xff]  }
 0x161   :  { %2666 = vmatpush1.bf16.msra.mxu0 %v4144_v30  ;;  %2752 = vmatpush1.bf16.msra.mxu1 %v4147_v31  ;;  %v4183_v30 = vld [vmem:[#allocation7 + $0x268] ss:$16 sps:$4 sm:$0xff]   ;;  %v4188_v31 = vld [vmem:[#allocation7 + $0x284] ss:$16 sps:$4 sm:$0xff]  }
 0x162   :  { %2667 = vmatprep.subr.bf16.mxu0 %v4152_v32  ;;  %2753 = vmatprep.subr.bf16.mxu1 %v4155_v33  ;;  %v4191_v32 = vld [vmem:[#allocation7 + $0x28c] ss:$16 sps:$4 sm:$0xff]   ;;  %v4186_v33 = vld [vmem:[#allocation7 + $0x280] ss:$16 sps:$4 sm:$0xff]  }
 0x165   :  { %2668 = vmatpush1.bf16.msra.mxu0 %v4150_v34  ;;  %2754 = vmatpush1.bf16.msra.mxu1 %v4153_v35  ;;  %v4189_v34 = vld [vmem:[#allocation7 + $0x288] ss:$16 sps:$4 sm:$0xff]   ;;  %v4194_v35 = vld [vmem:[#allocation7 + $0x2a4] ss:$16 sps:$4 sm:$0xff]  }
 0x166   :  { %2669 = vmatprep.subr.bf16.mxu0 %v4158_v36  ;;  %2755 = vmatprep.subr.bf16.mxu1 %v4161_v37  ;;  %v4197_v36 = vld [vmem:[#allocation7 + $0x2ac] ss:$16 sps:$4 sm:$0xff]   ;;  %v4192_v37 = vld [vmem:[#allocation7 + $0x2a0] ss:$16 sps:$4 sm:$0xff]  }
 0x169   :  { %2670 = vmatpush1.bf16.msra.mxu0 %v4156_v38  ;;  %2756 = vmatpush1.bf16.msra.mxu1 %v4159_v39  ;;  %v4195_v38 = vld [vmem:[#allocation7 + $0x2a8] ss:$16 sps:$4 sm:$0xff]   ;;  %v4200_v39 = vld [vmem:[#allocation7 + $0x2c4] ss:$16 sps:$4 sm:$0xff]  }
 0x16a   :  { %2682 = vmatprep.subr.bf16.mxu0 %v4164_v40  ;;  %2768 = vmatprep.subr.bf16.mxu1 %v4167_v41  ;;  %v4203_v40 = vld [vmem:[#allocation7 + $0x2cc] ss:$16 sps:$4 sm:$0xff]   ;;  %v4198_v41 = vld [vmem:[#allocation7 + $0x2c0] ss:$16 sps:$4 sm:$0xff]  }
 0x1ff   :  { %v1656_v53 = vpop.f32.mrb[0].mxu0  ;;  %v1828_v54 = vpop.f32.mrb[0].mxu1 }
 0x200   :  { %v3660_v55 = vadd.f32 %v1656_v53, %v320_v49  ;;  %v3664_v56 = vadd.f32 %v1828_v54, %v328_v50  ;;  %v1658_v57 = vpop.f32.mrb[1].mxu0  ;;  %v1830_v58 = vpop.f32.mrb[1].mxu1  ;;  %v4215_v53 = vld [vmem:[#allocation7 + $0x30c] ss:$16 sps:$4 sm:$0xff]   ;;  %v4210_v54 = vld [vmem:[#allocation7 + $0x300] ss:$16 sps:$4 sm:$0xff]  }
 0x201   :  { %v3661_v59 = vadd.f32 %v1658_v57, %v324_v51  ;;  %v3665_v60 = vadd.f32 %v1830_v58, %v332_v52  ;;  %v1660_v61 = vpop.f32.mrb[2].mxu0  ;;  %v1832_v62 = vpop.f32.mrb[2].mxu1  ;;  %v4221_v57 = vld [vmem:[#allocation7 + $0x32c] ss:$16 sps:$4 sm:$0xff]   ;;  %v4216_v58 = vld [vmem:[#allocation7 + $0x320] ss:$16 sps:$4 sm:$0xff]  }
 0x202   :  { %v3662_v63 = vadd.f32 %v1660_v61, %v320_v49  ;;  %v3666_v0 = vadd.f32 %v1832_v62, %v328_v50  ;;  %v1662_v1 = vpop.f32.mrb[3].mxu0  ;;  %v1834_v2 = vpop.f32.mrb[3].mxu1  ;;  %v1837_v5 = vmax.f32 %v3660_v55, 0.0  ;;  %v1839_v6 = vmax.f32 %v3664_v56, 0.0  ;;  %v4209_v49 = vld [vmem:[#allocation7 + $0x2ec] ss:$16 sps:$4 sm:$0xff]  }
 0x203   :  { %v3663_v3 = vadd.f32 %v1662_v1, %v324_v51  ;;  %v3667_v4 = vadd.f32 %v1834_v2, %v332_v52  ;;  %v1838_v9 = vmax.f32 %v3661_v59, 0.0  ;;  %v1840_v10 = vmax.f32 %v3665_v60, 0.0  ;;  %v4204_v50 = vld [vmem:[#allocation7 + $0x2e0] ss:$16 sps:$4 sm:$0xff]   ;;  %v4207_v51 = vld [vmem:[#allocation7 + $0x2e8] ss:$16 sps:$4 sm:$0xff]  }
 0x204   :  { %v1841_v7 = vmax.f32 %v3662_v63, 0.0  ;;  %v1843_v8 = vmax.f32 %v3666_v0, 0.0  ;;  %v4212_v52 = vld [vmem:[#allocation7 + $0x304] ss:$16 sps:$4 sm:$0xff]   ;;  %v4213_v55 = vld [vmem:[#allocation7 + $0x308] ss:$16 sps:$4 sm:$0xff]  }
 0x205   :  { %v1842_v11 = vmax.f32 %v3663_v3, 0.0  ;;  %v1844_v12 = vmax.f32 %v3667_v4, 0.0  ;;  %v4218_v56 = vld [vmem:[#allocation7 + $0x324] ss:$16 sps:$4 sm:$0xff]   ;;  %v4219_v59 = vld [vmem:[#allocation7 + $0x328] ss:$16 sps:$4 sm:$0xff]  }
 0x206   :  { %v1845_v13 = vpack.c.bf16 %v1841_v7, %v1837_v5  ;;  %v4549_v14 = vpack.c.bf16 %v1843_v8, %v1839_v6  ;;  %v4224_v60 = vld [vmem:[#allocation7 + $0x344] ss:$16 sps:$4 sm:$0xff]   ;;  %v4227_v61 = vld [vmem:[#allocation7 + $0x34c] ss:$16 sps:$4 sm:$0xff]   ;;  %v4222_v62 = vld [vmem:[#allocation7 + $0x340] ss:$16 sps:$4 sm:$0xff]  }
 0x207   :  { %v1846_v15 = vpack.c.bf16 %v1842_v11, %v1838_v9  ;;  %v1848_v16 = vpack.c.bf16 %v1844_v12, %v1840_v10  ;;  %v4225_v63 = vld [vmem:[#allocation7 + $0x348] ss:$16 sps:$4 sm:$0xff]   ;;  %v4230_v0 = vld [vmem:[#allocation7 + $0x364] ss:$16 sps:$4 sm:$0xff]   ;;  %v4233_v1 = vld [vmem:[#allocation7 + $0x36c] ss:$16 sps:$4 sm:$0xff]  }
 0x208   :  { %v4228_v2 = vld [vmem:[#allocation7 + $0x360] ss:$16 sps:$4 sm:$0xff]   ;;  %v4231_v3 = vld [vmem:[#allocation7 + $0x368] ss:$16 sps:$4 sm:$0xff]   ;;  %v4236_v4 = vld [vmem:[#allocation7 + $0x384] ss:$16 sps:$4 sm:$0xff]  }
 0x209   :  { %2671 = vmatprep.mubr.bf16.mxu0 %v1846_v15  ;;  %2757 = vmatprep.mubr.bf16.mxu1 %v1846_v15  ;;  %v4239_v5 = vld [vmem:[#allocation7 + $0x38c] ss:$16 sps:$4 sm:$0xff]   ;;  %v4234_v6 = vld [vmem:[#allocation7 + $0x380] ss:$16 sps:$4 sm:$0xff]   ;;  %v4237_v7 = vld [vmem:[#allocation7 + $0x388] ss:$16 sps:$4 sm:$0xff]  }
 0x20a   :  { %2672 = vmatmul.mubr.bf16.vlgmr.msra.gmra.mrb[4].mxu0 %v1845_v13  ;;  %2758 = vmatmul.mubr.bf16.vlgmr.msra.gmra.mrb[4].mxu1 %v1845_v13  ;;  %v4242_v8 = vld [vmem:[#allocation7 + $0x3a4] ss:$16 sps:$4 sm:$0xff]   ;;  %v4245_v9 = vld [vmem:[#allocation7 + $0x3ac] ss:$16 sps:$4 sm:$0xff]   ;;  %v4240_v10 = vld [vmem:[#allocation7 + $0x3a0] ss:$16 sps:$4 sm:$0xff]  }
 0x20b   :  { %2683 = vmatpush1.bf16.msra.mxu0 %v4162_v17  ;;  %2769 = vmatpush1.bf16.msra.mxu1 %v4165_v18  ;;  %v4243_v11 = vld [vmem:[#allocation7 + $0x3a8] ss:$16 sps:$4 sm:$0xff]   ;;  %v4248_v12 = vld [vmem:[#allocation7 + $0x3c4] ss:$16 sps:$4 sm:$0xff]   ;;  %v4251_v13 = vld [vmem:[#allocation7 + $0x3cc] ss:$16 sps:$4 sm:$0xff]  }
 0x20c   :  { %2714 = vmatprep.mubr.bf16.mxu0 %v1848_v16  ;;  %2800 = vmatprep.mubr.bf16.mxu1 %v1848_v16  ;;  %v4246_v15 = vld [vmem:[#allocation7 + $0x3c0] ss:$16 sps:$4 sm:$0xff]   ;;  %v4249_v16 = vld [vmem:[#allocation7 + $0x3c8] ss:$16 sps:$4 sm:$0xff]   ;;  %v4254_v17 = vld [vmem:[#allocation7 + $0x3e4] ss:$16 sps:$4 sm:$0xff]  }
 0x20d   :  { %2684 = vmatprep.subr.bf16.mxu0 %v4170_v19  ;;  %2770 = vmatprep.subr.bf16.mxu1 %v4173_v20  ;;  %v4257_v18 = vld [vmem:[#allocation7 + $0x3ec] ss:$16 sps:$4 sm:$0xff]   ;;  %v4252_v19 = vld [vmem:[#allocation7 + $0x3e0] ss:$16 sps:$4 sm:$0xff]   ;;  %v4255_v20 = vld [vmem:[#allocation7 + $0x3e8] ss:$16 sps:$4 sm:$0xff]  }
 0x20f   :  { %2685 = vmatpush1.bf16.msra.mxu0 %v4168_v21  ;;  %2771 = vmatpush1.bf16.msra.mxu1 %v4171_v22  ;;  %v4258_v21 = vld [vmem:[#allocation8 + $0x40] sm:$0xff]  }
 0x210   :  { %2686 = vmatprep.subr.bf16.mxu0 %v4176_v23  ;;  %2772 = vmatprep.subr.bf16.mxu1 %v4179_v24  ;;  %v4259_v22 = vld [vmem:[#allocation8 + $0xc0] sm:$0xff]  }
 0x211   :  { %v4260_v23 = vld [vmem:[#allocation8] sm:$0xff]  }
 0x212   :  { %v4261_v24 = vld [vmem:[#allocation8 + $0x80] sm:$0xff]  }
 0x213   :  { %2687 = vmatpush1.bf16.msra.mxu0 %v4174_v25  ;;  %2773 = vmatpush1.bf16.msra.mxu1 %v4177_v26  ;;  %v4262_v25 = vld [vmem:[#allocation8 + $0x48] sm:$0xff]  }
 0x214   :  { %2688 = vmatprep.subr.bf16.mxu0 %v4182_v27  ;;  %2774 = vmatprep.subr.bf16.mxu1 %v4185_v28  ;;  %v4263_v26 = vld [vmem:[#allocation8 + $0xc8] sm:$0xff]  }
 0x215   :  { %v4264_v27 = vld [vmem:[#allocation8 + $0x8] sm:$0xff]  }
 0x216   :  { %v4265_v28 = vld [vmem:[#allocation8 + $0x88] sm:$0xff]  }
 0x217   :  { %2689 = vmatpush1.bf16.msra.mxu0 %v4180_v29  ;;  %2775 = vmatpush1.bf16.msra.mxu1 %v4183_v30  ;;  %v4266_v29 = vld [vmem:[#allocation8 + $0x50] sm:$0xff]  }
 0x218   :  { %2690 = vmatprep.subr.bf16.mxu0 %v4188_v31  ;;  %2776 = vmatprep.subr.bf16.mxu1 %v4191_v32  ;;  %v4267_v30 = vld [vmem:[#allocation8 + $0xd0] sm:$0xff]  }
 0x219   :  { %v4268_v31 = vld [vmem:[#allocation8 + $0x10] sm:$0xff]  }
 0x21a   :  { %v4269_v32 = vld [vmem:[#allocation8 + $0x90] sm:$0xff]  }
 0x21b   :  { %2691 = vmatpush1.bf16.msra.mxu0 %v4186_v33  ;;  %2777 = vmatpush1.bf16.msra.mxu1 %v4189_v34  ;;  %v4270_v33 = vld [vmem:[#allocation8 + $0x58] sm:$0xff]  }
 0x21c   :  { %2692 = vmatprep.subr.bf16.mxu0 %v4194_v35  ;;  %2778 = vmatprep.subr.bf16.mxu1 %v4197_v36  ;;  %v4271_v34 = vld [vmem:[#allocation8 + $0xd8] sm:$0xff]   ;;  %v4274_v36 = vld [vmem:[#allocation8 + $0x60] sm:$0xff]  }
 0x21d   :  { %v4272_v35 = vld [vmem:[#allocation8 + $0x18] sm:$0xff]  }
 0x21f   :  { %2693 = vmatpush1.bf16.msra.mxu0 %v4192_v37  ;;  %2779 = vmatpush1.bf16.msra.mxu1 %v4195_v38  ;;  %v4275_v37 = vld [vmem:[#allocation8 + $0xe0] sm:$0xff]  }
 0x220   :  { %2694 = vmatprep.subr.bf16.mxu0 %v4200_v39  ;;  %2780 = vmatprep.subr.bf16.mxu1 %v4203_v40  ;;  %v4276_v38 = vld [vmem:[#allocation8 + $0x20] sm:$0xff]   ;;  %v4278_v40 = vld [vmem:[#allocation8 + $0x68] sm:$0xff]  }
 0x221   :  { %v4277_v39 = vld [vmem:[#allocation8 + $0xa0] sm:$0xff]  }
 0x223   :  { %2695 = vmatpush1.bf16.msra.mxu0 %v4198_v41  ;;  %2781 = vmatpush1.bf16.msra.mxu1 %v4201_v42  ;;  %v4279_v41 = vld [vmem:[#allocation8 + $0xe8] sm:$0xff]  }
 0x224   :  { %2696 = vmatprep.subr.bf16.mxu0 %v4206_v46  ;;  %2782 = vmatprep.subr.bf16.mxu1 %v4209_v49  ;;  %v4280_v42 = vld [vmem:[#allocation8 + $0x28] sm:$0xff]   ;;  %v4282_v49 = vld [vmem:[#allocation8 + $0x70] sm:$0xff]  }
 0x225   :  { %v4281_v46 = vld [vmem:[#allocation8 + $0xa8] sm:$0xff]  }
 0x227   :  { %2697 = vmatpush1.bf16.msra.mxu0 %v4204_v50  ;;  %2783 = vmatpush1.bf16.msra.mxu1 %v4207_v51  ;;  %v4283_v50 = vld [vmem:[#allocation8 + $0xf0] sm:$0xff]  }
 0x228   :  { %2698 = vmatprep.subr.bf16.mxu0 %v4212_v52  ;;  %2784 = vmatprep.subr.bf16.mxu1 %v4215_v53  ;;  %v4284_v51 = vld [vmem:[#allocation8 + $0x30] sm:$0xff]   ;;  %v4286_v53 = vld [vmem:[#allocation8 + $0x78] sm:$0xff]  }
 0x229   :  { %v4285_v52 = vld [vmem:[#allocation8 + $0xb0] sm:$0xff]  }
 0x22b   :  { %2699 = vmatpush1.bf16.msra.mxu0 %v4210_v54  ;;  %2785 = vmatpush1.bf16.msra.mxu1 %v4213_v55  ;;  %v4287_v54 = vld [vmem:[#allocation8 + $0xf8] sm:$0xff]  }
 0x22c   :  { %2700 = vmatprep.subr.bf16.mxu0 %v4218_v56  ;;  %2786 = vmatprep.subr.bf16.mxu1 %v4221_v57  ;;  %v4288_v55 = vld [vmem:[#allocation8 + $0x38] sm:$0xff]   ;;  %v1977_v57 = vld [vmem:[%s4586_s4] sm:$0xf] }
 0x22d   :  { %v4289_v56 = vld [vmem:[#allocation8 + $0xb8] sm:$0xff]  }
 0x22f   :  { %2701 = vmatpush1.bf16.msra.mxu0 %v4216_v58  ;;  %2787 = vmatpush1.bf16.msra.mxu1 %v4219_v59  ;;  %v1982_v58 = vrot.slane %v1977_v57, %v319_v44  ;;  %v1990_v59 = vrot.slane %v1977_v57, %v327_v45 }
 0x230   :  { %2702 = vmatprep.subr.bf16.mxu0 %v4224_v60  ;;  %2788 = vmatprep.subr.bf16.mxu1 %v4227_v61  ;;  %v1986_v60 = vrot.slane %v1977_v57, %v323_v47  ;;  %v1994_v61 = vrot.slane %v1977_v57, %v331_v48 }
 0x233   :  { %2703 = vmatpush1.bf16.msra.mxu0 %v4222_v62  ;;  %2789 = vmatpush1.bf16.msra.mxu1 %v4225_v63 }
 0x234   :  { %2704 = vmatprep.subr.bf16.mxu0 %v4230_v0  ;;  %2790 = vmatprep.subr.bf16.mxu1 %v4233_v1 }
 0x237   :  { %2705 = vmatpush1.bf16.msra.mxu0 %v4228_v2  ;;  %2791 = vmatpush1.bf16.msra.mxu1 %v4231_v3 }
 0x238   :  { %2706 = vmatprep.subr.bf16.mxu0 %v4236_v4  ;;  %2792 = vmatprep.subr.bf16.mxu1 %v4239_v5 }
 0x23b   :  { %2707 = vmatpush1.bf16.msra.mxu0 %v4234_v6  ;;  %2793 = vmatpush1.bf16.msra.mxu1 %v4237_v7 }
 0x23c   :  { %2708 = vmatprep.subr.bf16.mxu0 %v4242_v8  ;;  %2794 = vmatprep.subr.bf16.mxu1 %v4245_v9 }
 0x23f   :  { %2709 = vmatpush1.bf16.msra.mxu0 %v4240_v10  ;;  %2795 = vmatpush1.bf16.msra.mxu1 %v4243_v11 }
 0x240   :  { %2710 = vmatprep.subr.bf16.mxu0 %v4248_v12  ;;  %2796 = vmatprep.subr.bf16.mxu1 %v4251_v13 }
 0x243   :  { %2711 = vmatpush1.bf16.msra.mxu0 %v4246_v15  ;;  %2797 = vmatpush1.bf16.msra.mxu1 %v4249_v16 }
 0x244   :  { %2712 = vmatprep.subr.bf16.mxu0 %v4254_v17  ;;  %2798 = vmatprep.subr.bf16.mxu1 %v4257_v18 }
 0x247   :  { %2713 = vmatpush1.bf16.msra.mxu0 %v4252_v19  ;;  %2799 = vmatpush1.bf16.msra.mxu1 %v4255_v20 }
 0x248   :  { %3616 = vmatprep.subr.bf16.mxu0 %v4258_v21  ;;  %3638 = vmatprep.subr.bf16.mxu1 %v4259_v22 }
 0x24a   :  { %2715 = vmatmul.mubr.bf16.vlgmr.msra.gmra.mrb[4].mxu0 %v4549_v14  ;;  %2801 = vmatmul.mubr.bf16.vlgmr.msra.gmra.mrb[4].mxu1 %v4549_v14  ;;  %v4273_v14 = vld [vmem:[#allocation8 + $0x98] sm:$0xff]  }
 0x24b   :  { %3617 = vmatpush3.bf16.msra.mxu0 %v4260_v23  ;;  %3639 = vmatpush3.bf16.msra.mxu1 %v4261_v24  ;;  %v3574_v24 = vld [vmem:[%s4588_s6] ss:$0 sm:$0xff]  ;;  %s4427_s6 = smov [#allocation10]  }
 0x24c   :  { %3618 = vmatprep.subr.bf16.mxu0 %v4262_v25  ;;  %3640 = vmatprep.subr.bf16.mxu1 %v4263_v26  ;;  %s3201_s8 = sshll.u32 %s4427_s6, 4  ;;  %s3202_s8 = int_to_ptr.vmem [resolvable:$true] %s3201_s8 }
 0x24d   :  { %s4386_s9 = scalar_lea.vmem %s3202_s8, 128  ;;  %p4391_p5 = scmp.lt.s32.totalorder %s3202_s8, %s3202_s8 }
 0x24e   :  { %p4387_p4 = scmp.ne.s32.totalorder %s3202_s8, %s4386_s9  ;;  %p4392_p6 = scmp.lt.s32.totalorder %s4386_s9, %s4386_s9 }
 0x24f   :  { %3619 = vmatpush3.bf16.msra.mxu0 %v4264_v27  ;;  %3641 = vmatpush3.bf16.msra.mxu1 %v4265_v28 }
 0x250   :  { %3620 = vmatprep.subr.bf16.mxu0 %v4266_v29  ;;  %3642 = vmatprep.subr.bf16.mxu1 %v4267_v30  ;;  %p4393_p7 = por %p4392_p6, %p4391_p5 }
 0x252   :  { %p4394_p8 = pnand %p4393_p7, %p4387_p4 }
 0x253   :  { %3621 = vmatpush3.bf16.msra.mxu0 %v4268_v31  ;;  %3643 = vmatpush3.bf16.msra.mxu1 %v4269_v32 }
 0x254   :  { %3622 = vmatprep.subr.bf16.mxu0 %v4270_v33  ;;  %3644 = vmatprep.subr.bf16.mxu1 %v4271_v34 }
 0x257   :  { %3623 = vmatpush3.bf16.msra.mxu0 %v4272_v35  ;;  %3645 = vmatpush3.bf16.msra.mxu1 %v4273_v14 }
 0x258   :  { %3624 = vmatprep.subr.bf16.mxu0 %v4274_v36  ;;  %3646 = vmatprep.subr.bf16.mxu1 %v4275_v37 }
 0x25b   :  { %3625 = vmatpush3.bf16.msra.mxu0 %v4276_v38  ;;  %3647 = vmatpush3.bf16.msra.mxu1 %v4277_v39 }
 0x25c   :  { %3626 = vmatprep.subr.bf16.mxu0 %v4278_v40  ;;  %3648 = vmatprep.subr.bf16.mxu1 %v4279_v41 }
 0x25f   :  { %3627 = vmatpush3.bf16.msra.mxu0 %v4280_v42  ;;  %3649 = vmatpush3.bf16.msra.mxu1 %v4281_v46 }
 0x260   :  { %3628 = vmatprep.subr.bf16.mxu0 %v4282_v49  ;;  %3650 = vmatprep.subr.bf16.mxu1 %v4283_v50 }
 0x263   :  { %3629 = vmatpush3.bf16.msra.mxu0 %v4284_v51  ;;  %3651 = vmatpush3.bf16.msra.mxu1 %v4285_v52 }
 0x264   :  { %3630 = vmatprep.subr.bf16.mxu0 %v4286_v53  ;;  %3652 = vmatprep.subr.bf16.mxu1 %v4287_v54 }
 0x267   :  { %3631 = vmatpush3.bf16.msra.mxu0 %v4288_v55  ;;  %3653 = vmatpush3.bf16.msra.mxu1 %v4289_v56 }
 0x31d   :  { %v2716_v62 = vpop.f32.mrb[4].mxu0  ;;  %v2802_v63 = vpop.f32.mrb[4].mxu1 }
 0x31e   :  { %v3668_v0 = vadd.f32 %v2716_v62, %v1982_v58  ;;  %v3672_v1 = vadd.f32 %v2802_v63, %v1990_v59  ;;  %v2718_v2 = vpop.f32.mrb[5].mxu0  ;;  %v2804_v3 = vpop.f32.mrb[5].mxu1 }
 0x31f   :  { %v3669_v4 = vadd.f32 %v2718_v2, %v1986_v60  ;;  %v3673_v5 = vadd.f32 %v2804_v3, %v1994_v61  ;;  %v2720_v6 = vpop.f32.mrb[6].mxu0  ;;  %v2806_v7 = vpop.f32.mrb[6].mxu1 }
 0x320   :  { %v3670_v44 = vadd.f32 %v2720_v6, %v1982_v58  ;;  %v3674_v8 = vadd.f32 %v2806_v7, %v1990_v59  ;;  %v2722_v9 = vpop.f32.mrb[7].mxu0  ;;  %v2808_v45 = vpop.f32.mrb[7].mxu1  ;;  %v2811_v47 = vmax.f32 %v3668_v0, 0.0  ;;  %v2813_v12 = vmax.f32 %v3672_v1, 0.0 }
 0x321   :  { %v3671_v10 = vadd.f32 %v2722_v9, %v1986_v60  ;;  %v3675_v11 = vadd.f32 %v2808_v45, %v1994_v61  ;;  %v2812_v13 = vmax.f32 %v3669_v4, 0.0  ;;  %v2814_v15 = vmax.f32 %v3673_v5, 0.0 }
 0x322   :  { %v2815_v43 = vmax.f32 %v3670_v44, 0.0  ;;  %v2817_v48 = vmax.f32 %v3674_v8, 0.0 }
 0x323   :  { %v2816_v16 = vmax.f32 %v3671_v10, 0.0  ;;  %v2818_v17 = vmax.f32 %v3675_v11, 0.0 }
 0x324   :  { %v2819_v18 = vpack.c.bf16 %v2815_v43, %v2811_v47  ;;  %v2821_v19 = vpack.c.bf16 %v2817_v48, %v2813_v12 }
 0x325   :  { %v2820_v20 = vpack.c.bf16 %v2816_v16, %v2812_v13  ;;  %v2822_v21 = vpack.c.bf16 %v2818_v17, %v2814_v15 }
 0x327   :  { %3118 = vmatprep.mubr.bf16.mxu0 %v2820_v20  ;;  %3159 = vmatprep.mubr.bf16.mxu1 %v2822_v21 }
 0x328   :  { %3119 = vmatmul.mubr.bf16.vlgmr.msra.gmra.mrb[8].mxu0 %v2819_v18  ;;  %3160 = vmatmul.mubr.bf16.vlgmr.msra.gmra.mrb[8].mxu1 %v2821_v19 }
 0x3fb   :  { %v3632_v22 = vpop.f32.mrb[8].mxu0  ;;  %v3654_v23 = vpop.f32.mrb[8].mxu1 }
 0x3fc   :  { %v3633_v25 = vpop.f32.mrb[9].mxu0  ;;  %v3655_v26 = vpop.f32.mrb[9].mxu1 }
 0x3fd   :  { %v3634_v27 = vadd.f32 %v3633_v25, %v3632_v22  ;;  %v3656_v28 = vadd.f32 %v3655_v26, %v3654_v23  ;;  %v3635_v29 = vpop.f32.mrb[10].mxu0  ;;  %v3657_v30 = vpop.f32.mrb[10].mxu1 }
 0x3fe   :  { %v3636_v31 = vpop.f32.mrb[11].mxu0  ;;  %v3658_v32 = vpop.f32.mrb[11].mxu1 }
 0x3ff   :  { %v3121_v33 = vadd.f32 %v3634_v27, %v3574_v24  ;;  %v3637_v34 = vadd.f32 %v3636_v31, %v3635_v29  ;;  %v3659_v35 = vadd.f32 %v3658_v32, %v3657_v30 }
 0x401   :  { %v3124_v14 = vadd.f32 %v3637_v34, %v3574_v24  ;;  %v3162_v36 = vadd.f32 %v3656_v28, %v3121_v33 }
 0x403   :  { %3168 = vmax.xlane.f32.xlu0 %v3162_v36  ;;  %v3165_v37 = vadd.f32 %v3659_v35, %v3124_v14 }
 0x407   :  { %3170 = vmax.xlane.f32.xlu0 %v3165_v37 }
 0x490   :  { %v3169_v38 = vpop.xlane.xlu0 %3168 }
 0x491   :  { %v3172_v39 = vsub.f32 %v3162_v36, %v3169_v38 }
 0x493   :  { %v3174_v40 = vmul.f32 1.442695, %v3172_v39 }
 0x494   :  { %v3171_v41 = vpop.xlane.xlu0 %3170 }
 0x495   :  { %4290 = vpow2.f32 %v3174_v40  ;;  %v3173_v42 = vsub.f32 %v3165_v37, %v3171_v41 }
 0x497   :  { %v3176_v46 = vmul.f32 1.442695, %v3173_v42 }
 0x499   :  { %4292 = vpow2.f32 %v3176_v46 }
 0x49f   :  { %v4291_v49 = vpop.eup %4290 }
 0x4a0   :  { %3178 = vadd.xlane.f32.xlu1 %v4291_v49 }
 0x4a3   :  { %v4293_v50 = vpop.eup %4292 }
 0x4a4   :  { %3180 = vadd.xlane.f32.xlu1 %v4293_v50 }
 0x52d   :  { %v3179_v51 = vpop.xlane.xlu1 %3178 }
 0x52e   :  { %4294 = vrcp.f32 %v3179_v51 }
 0x531   :  { %v3181_v52 = vpop.xlane.xlu1 %3180 }
 0x532   :  { %4296 = vrcp.f32 %v3181_v52 }
 0x538   :  { %v4295_v53 = vpop.eup %4294 }
 0x539   :  { %v3184_v55 = vmul.f32 %v4295_v53, %v4291_v49 }
 0x53c   :  { %v4297_v54 = vpop.eup %4296 }
 0x53d   :  { %v3185_v56 = vmul.f32 %v4297_v54, %v4293_v50 }
 0x53f   :  { %v3614_v57 = vpack.c.bf16 %v3185_v56, %v3184_v55 }
 0x541   :  { %3615 = vst [vmem:[#allocation10] sm:$0xff] %v3614_v57  }
 0x542   :  { %4397 = shalt.err (!%p4394_p8)
}
 0x543   :  { %s4398_s14 = scalar_lea.hbm %s4589_s7, 128 }
 0x544   :  { %p4399_p9 = scmp.ne.s32.totalorder %s4589_s7, %s4398_s14  ;;  %p4402_p10 = scmp.lt.u32.totalorder %s4398_s14, %s4589_s7 }
 0x546   :  { %p4404_p11 = pnand %p4402_p10, %p4399_p9 }
 0x548   :  { %4407 = shalt.err (!%p4404_p11)
}
 0x549   :  { %3207 = dma.vmem_to_hbm [thread:$0]  %s3202_s8, 128, %s4589_s7, [#allocation4], %s4424_s3, %s4424_s3, %s4425_s11  }
 0x54a   :  { %4414 = dma.done.wait [#allocation4], 128  }
 0x54b   :  { %4415 = vsyncadd [#allocation4], 4294967168 }
 0x54c   :  { %3211 = vsyncpa [#allocation3], 1 }
 0x54d   :  { %3212 = vsyncpa [#allocation6], 1 }
 0x54e   :  { %3213 = vsyncpa [#allocation9], 1 }
 0x54f   :  { %3214 = vsyncpa [#allocation4], 1 }

</bundles_post_ra>
